<compile_context>
chip_gen: v5e
topology: v5e:2x2
jax: 0.10.0
libtpu: 0.0.40
codegen_flags: <defaults>
</compile_context>

<pallas_src>
import functools
from dataclasses import dataclass

import jax
import jax.numpy as jnp
from jax import lax
from jax.experimental import pallas as pl
from jax.experimental.pallas import tpu as pltpu


@dataclass(frozen=True)
class QuantumFluxConfig:
    embed_dim: int = 64
    max_seq_length: int = 8
    dt_scale: float = 0.01
    dt_max: float = 0.1
    radius_update_rate: float = 0.01
    min_radius: float = 0.1
    max_radius: float = 2.0


def _nan_or_inf(x):
    return jnp.isnan(x) | jnp.isinf(x)


def _integrator_kernel(dt_ref, r_ref, rf_ref, score_ref, unstable_ref, *, causal, cfg):
    """Lane layout:
         r_ref / rf_ref : (E, S, B)    score_ref : (S, S, B)
         dt_ref         : (1, B)       unstable  : (1, B)
       Batch sits on the vreg lane axis; all math is broadcast-multiply on the
       VPU plus sublane reductions on the XLU (no MXU for these tiny shapes)."""
    E, S, B = r_ref.shape

    rs = [r_ref[e] for e in range(E)]            # E x (S, B)
    dt_row = dt_ref[...]                         # (1, B), broadcasts over S

    # Causal mask built ONCE, reused by both Heun-Euler stages.
    if causal:
        row = lax.broadcasted_iota(jnp.int32, (S, S, B), 0)
        col = lax.broadcasted_iota(jnp.int32, (S, S, B), 1)
        mask_f = (col <= row).astype(jnp.float32)
    else:
        mask_f = None

    def compute_score(xs):
        # TODO(synk): stand-in for QuantumAttention.compute_score (source not
        # provided): causal cosine similarity mapped to [0,1], row-normalized.
        sim = xs[0][:, None, :] * xs[0][None, :, :]          # (S, S, B)
        nsq = xs[0] * xs[0]                                  # (S, B)
        for e in range(1, E):
            sim = sim + xs[e][:, None, :] * xs[e][None, :, :]
            nsq = nsq + xs[e] * xs[e]
        nrm = jnp.sqrt(nsq)
        denom = jnp.maximum(nrm[:, None, :] * nrm[None, :, :], 1e-6)
        sc = (sim / denom + 1.0) * 0.5
        if mask_f is not None:
            sc = sc * mask_f
        sc = sc / jnp.maximum(jnp.sum(sc, axis=1, keepdims=True), 1e-6)
        return sc

    def context(sc, xs):
        # context[i, e, b] = sum_j sc[i, j, b] * x[e, j, b]  (VPU mul + XLU sum)
        return [jnp.sum(sc * xs[e][None, :, :], axis=1) for e in range(E)]

    # ---- Heun-Euler stage 1 -------------------------------------------------
    score = compute_score(rs)                                 # (S, S, B)
    c1 = context(score, rs)
    k1, r_mid = [], []
    for e in range(E):
        k = dt_row * c1[e]
        k = jnp.where(_nan_or_inf(k), jnp.zeros_like(k), k)
        rm = rs[e] + k
        rm = jnp.where(_nan_or_inf(rm), rs[e], rm)
        k1.append(k)
        r_mid.append(rm)

    # ---- Heun-Euler stage 2 -------------------------------------------------
    score_mid = compute_score(r_mid)
    c2 = context(score_mid, r_mid)
    r_new = []
    for e in range(E):
        k = dt_row * c2[e]
        k = jnp.where(_nan_or_inf(k), jnp.zeros_like(k), k)
        r_new.append(rs[e] + 0.5 * (k1[e] + k))

    # ---- Radius adjustment --------------------------------------------------
    nsq_new = r_new[0] * r_new[0]
    for e in range(1, E):
        nsq_new = nsq_new + r_new[e] * r_new[e]
    new_radius = jnp.maximum(jnp.sqrt(nsq_new), 1e-6)                  # (S, B)
    radius_adjustment = jnp.sum(score, axis=1) * cfg.radius_update_rate
    adjusted_radius = jnp.clip(new_radius + radius_adjustment,
                               cfg.min_radius, cfg.max_radius)
    # NOTE: matches the PyTorch reference; the ratio can be large if r_new ~ 0.
    scale_factor = adjusted_radius / new_radius

    rf_raw = [r_new[e] * scale_factor for e in range(E)]
    bad_e = [_nan_or_inf(x) for x in rf_raw]

    bad_any = bad_e[0]
    for e in range(1, E):
        bad_any = bad_any | bad_e[e]
    unstable_ref[...] = jnp.max(bad_any.astype(jnp.float32), axis=0, keepdims=True)

    for e in range(E):
        rf_ref[e] = jnp.where(bad_e[e], rs[e], rf_raw[e])
    score_ref[...] = score


def quantum_integrator_forward(r_embed, dt, *, causal=True,
                               cfg=QuantumFluxConfig()):
    """r_embed: (B, S, 2) float32, dt: (B,) float32."""
    B, S, E = r_embed.shape
    r_l = jnp.transpose(r_embed.astype(jnp.float32), (2, 1, 0))   # (E, S, B)
    dt_l = dt.astype(jnp.float32).reshape(1, B)                   # (1, B)

    kernel = functools.partial(_integrator_kernel, causal=causal, cfg=cfg)

    out_shapes = (
        jax.ShapeDtypeStruct((E, S, B), jnp.float32),   # r_final (lane layout)
        jax.ShapeDtypeStruct((S, S, B), jnp.float32),   # score   (lane layout)
        jax.ShapeDtypeStruct((1, B), jnp.float32),      # per-batch unstable flag
    )

    rf_l, score_l, unstable = pl.pallas_call(
        kernel,
        out_shape=out_shapes,
        grid_spec=pltpu.PrefetchScalarGridSpec(
            num_scalar_prefetch=0,
            grid=(1,),
            in_specs=[
                pl.BlockSpec((1, B), lambda i: (0, 0)),          # dt
                pl.BlockSpec((E, S, B), lambda i: (0, 0, 0)),    # r_embed
            ],
            out_specs=[
                pl.BlockSpec((E, S, B), lambda i: (0, 0, 0)),
                pl.BlockSpec((S, S, B), lambda i: (0, 0, 0)),
                pl.BlockSpec((1, B), lambda i: (0, 0)),
            ],
        ),
        compiler_params=pltpu.CompilerParams(
            dimension_semantics=("parallel",)),
    )(dt_l, r_l)

    # Back to the PyTorch layout.
    r_final = jnp.transpose(rf_l, (2, 1, 0))     # (B, S, E)
    score = jnp.transpose(score_l, (2, 0, 1))    # (B, S, S)

    # ---- metrics (wrapper-side glue math on tiny arrays) --------------------
    final_radius = jnp.sqrt(jnp.sum(r_final * r_final, axis=-1))   # (B, S)
    rad_mean = jnp.mean(final_radius)
    rad_std = jnp.std(final_radius, ddof=1)                        # torch unbiased std
    rn = r_final / jnp.maximum(final_radius[..., None], 1e-6)
    row_sum = jnp.sum(rn, axis=1)                                  # (B, E)
    # mean(rn rn^T) over (B,S,S) == sum_b ||sum_s rn_bs||^2 / (B*S*S)
    coherence = jnp.sum(row_sum * row_sum) / float(B * S * S)
    unstable_flag = (jnp.max(unstable) > 0.0).astype(jnp.float32)

    u, m, s_, c = jax.device_get((unstable_flag, rad_mean, rad_std, coherence))
    metrics = {
        "integration_unstable": float(u),
        "final_radius_mean": float(m),
        "final_radius_std": float(s_),
        "geometric_coherence": float(c),
    }
    return r_final, score, metrics


def sample_timestep(key, batch_size, cfg):
    """JAX equivalent of QuantumIntegrator.sample_timestep (deterministic via key)."""
    a = (cfg.embed_dim - 2) / 2.0
    b = (cfg.max_seq_length - 1) / 2.0
    x = jax.random.beta(key, a, b, shape=(batch_size,), dtype=jnp.float32)
    x = jnp.clip(x, 0.001, 0.999)
    dt = jnp.clip((1.0 / x) * cfg.dt_scale, 1e-6, cfg.dt_max)
    return dt


if __name__ == "__main__":
    cfg = QuantumFluxConfig(embed_dim=64, max_seq_length=8)
    B, S, E = 2, 8, 2   # r_embed is (batch, seq, 2) per the module contract

    key = jax.random.PRNGKey(0)
    k_r, k_dt = jax.random.split(key)
    r_embed = jax.random.normal(k_r, (B, S, E), dtype=jnp.float32) * 0.5
    dt = sample_timestep(k_dt, B, cfg)

    r_final, score, metrics = quantum_integrator_forward(
        r_embed, dt, causal=True, cfg=cfg)
    jax.block_until_ready((r_final, score))

    assert r_final.shape == (B, S, E)
    assert score.shape == (B, S, S)
    assert all(k in metrics for k in
               ("integration_unstable", "final_radius_mean",
                "final_radius_std", "geometric_coherence"))
    print("KERNEL_OK")
</pallas_src>

<mosaic_0001>
module attributes {stable_mosaic.version = 11 : i64} {
  func.func @_integrator_kernel(%arg0: i32, %arg1: memref<1x2xf32, #tpu.memory_space<vmem>>, %arg2: memref<2x8x2xf32, #tpu.memory_space<vmem>>, %arg3: memref<2x8x2xf32, #tpu.memory_space<vmem>>, %arg4: memref<8x8x2xf32, #tpu.memory_space<vmem>>, %arg5: memref<1x2xf32, #tpu.memory_space<vmem>>) attributes {dimension_semantics = [#tpu.dimension_semantics<parallel>], iteration_bounds = array<i64: 1>, scalar_prefetch = 0 : i64, scratch_operands = 0 : i64, tpu.core_type = #tpu.core_type<tc>, window_params = [{pipeline_mode = #tpu.pipeline_mode<synchronous>, transform_indices = @transform_0, window_bounds = array<i64: 1, 2>}, {pipeline_mode = #tpu.pipeline_mode<synchronous>, transform_indices = @transform_1, window_bounds = array<i64: 2, 8, 2>}, {pipeline_mode = #tpu.pipeline_mode<synchronous>, transform_indices = @transform_2, window_bounds = array<i64: 2, 8, 2>}, {pipeline_mode = #tpu.pipeline_mode<synchronous>, transform_indices = @transform_3, window_bounds = array<i64: 8, 8, 2>}, {pipeline_mode = #tpu.pipeline_mode<synchronous>, transform_indices = @transform_4, window_bounds = array<i64: 1, 2>}]} {
    %c0 = arith.constant 0 : index
    %c0_0 = arith.constant 0 : index
    %c0_1 = arith.constant 0 : index
    %0 = vector.load %arg2[%c0, %c0_0, %c0_1] : memref<2x8x2xf32, #tpu.memory_space<vmem>>, vector<1x8x2xf32>
    %1 = vector.shape_cast %0 : vector<1x8x2xf32> to vector<8x2xf32>
    %c1 = arith.constant 1 : index
    %c0_2 = arith.constant 0 : index
    %c0_3 = arith.constant 0 : index
    %2 = vector.load %arg2[%c1, %c0_2, %c0_3] : memref<2x8x2xf32, #tpu.memory_space<vmem>>, vector<1x8x2xf32>
    %3 = vector.shape_cast %2 : vector<1x8x2xf32> to vector<8x2xf32>
    %c0_4 = arith.constant 0 : index
    %c0_5 = arith.constant 0 : index
    %4 = vector.load %arg1[%c0_4, %c0_5] : memref<1x2xf32, #tpu.memory_space<vmem>>, vector<1x2xf32>
    %5 = tpu.iota {dimensions = array<i32: 0>} : vector<8x8x2xi32>
    %6 = tpu.iota {dimensions = array<i32: 1>} : vector<8x8x2xi32>
    %7 = arith.cmpi sle, %6, %5 : vector<8x8x2xi32>
    %8 = arith.extui %7 : vector<8x8x2xi1> to vector<8x8x2xi32>
    %9 = arith.sitofp %8 : vector<8x8x2xi32> to vector<8x8x2xf32>
    %10 = vector.shape_cast %1 : vector<8x2xf32> to vector<8x1x2xf32>
    %11 = vector.shape_cast %1 : vector<8x2xf32> to vector<1x8x2xf32>
    %12 = vector.broadcast %10 : vector<8x1x2xf32> to vector<8x8x2xf32>
    %13 = vector.broadcast %11 : vector<1x8x2xf32> to vector<8x8x2xf32>
    %14 = arith.mulf %12, %13 : vector<8x8x2xf32>
    %15 = arith.mulf %1, %1 : vector<8x2xf32>
    %16 = vector.shape_cast %3 : vector<8x2xf32> to vector<8x1x2xf32>
    %17 = vector.shape_cast %3 : vector<8x2xf32> to vector<1x8x2xf32>
    %18 = vector.broadcast %16 : vector<8x1x2xf32> to vector<8x8x2xf32>
    %19 = vector.broadcast %17 : vector<1x8x2xf32> to vector<8x8x2xf32>
    %20 = arith.mulf %18, %19 : vector<8x8x2xf32>
    %21 = arith.addf %14, %20 : vector<8x8x2xf32>
    %22 = arith.mulf %3, %3 : vector<8x2xf32>
    %23 = arith.addf %15, %22 : vector<8x2xf32>
    %24 = math.sqrt %23 : vector<8x2xf32>
    %25 = vector.shape_cast %24 : vector<8x2xf32> to vector<8x1x2xf32>
    %26 = vector.shape_cast %24 : vector<8x2xf32> to vector<1x8x2xf32>
    %27 = vector.broadcast %25 : vector<8x1x2xf32> to vector<8x8x2xf32>
    %28 = vector.broadcast %26 : vector<1x8x2xf32> to vector<8x8x2xf32>
    %29 = arith.mulf %27, %28 : vector<8x8x2xf32>
    %cst = arith.constant 9.99999997E-7 : f32
    %30 = vector.broadcast %cst : f32 to vector<8x8x2xf32>
    %31 = arith.maximumf %29, %30 : vector<8x8x2xf32>
    %32 = arith.divf %21, %31 : vector<8x8x2xf32>
    %cst_6 = arith.constant 1.000000e+00 : f32
    %33 = vector.broadcast %cst_6 : f32 to vector<8x8x2xf32>
    %34 = arith.addf %32, %33 : vector<8x8x2xf32>
    %cst_7 = arith.constant 5.000000e-01 : f32
    %35 = vector.broadcast %cst_7 : f32 to vector<8x8x2xf32>
    %36 = arith.mulf %34, %35 : vector<8x8x2xf32>
    %37 = arith.mulf %36, %9 : vector<8x8x2xf32>
    %cst_8 = arith.constant dense<0.000000e+00> : vector<8x2xf32>
    %38 = vector.multi_reduction <add>, %37, %cst_8 [1] : vector<8x8x2xf32> to vector<8x2xf32>
    %39 = vector.shape_cast %38 : vector<8x2xf32> to vector<8x1x2xf32>
    %cst_9 = arith.constant 9.99999997E-7 : f32
    %40 = vector.broadcast %cst_9 : f32 to vector<8x1x2xf32>
    %41 = arith.maximumf %39, %40 : vector<8x1x2xf32>
    %42 = vector.broadcast %41 : vector<8x1x2xf32> to vector<8x8x2xf32>
    %43 = arith.divf %37, %42 : vector<8x8x2xf32>
    %44 = vector.shape_cast %1 : vector<8x2xf32> to vector<1x8x2xf32>
    %45 = vector.broadcast %44 : vector<1x8x2xf32> to vector<8x8x2xf32>
    %46 = arith.mulf %43, %45 : vector<8x8x2xf32>
    %cst_10 = arith.constant dense<0.000000e+00> : vector<8x2xf32>
    %47 = vector.multi_reduction <add>, %46, %cst_10 [1] : vector<8x8x2xf32> to vector<8x2xf32>
    %48 = vector.shape_cast %3 : vector<8x2xf32> to vector<1x8x2xf32>
    %49 = vector.broadcast %48 : vector<1x8x2xf32> to vector<8x8x2xf32>
    %50 = arith.mulf %43, %49 : vector<8x8x2xf32>
    %cst_11 = arith.constant dense<0.000000e+00> : vector<8x2xf32>
    %51 = vector.multi_reduction <add>, %50, %cst_11 [1] : vector<8x8x2xf32> to vector<8x2xf32>
    %52 = vector.broadcast %4 : vector<1x2xf32> to vector<8x2xf32>
    %53 = arith.mulf %52, %47 : vector<8x2xf32>
    %54 = arith.cmpf one, %53, %53 : vector<8x2xf32>
    %55 = math.absf %53 : vector<8x2xf32>
    %cst_12 = arith.constant 0x7F800000 : f32
    %56 = vector.broadcast %cst_12 : f32 to vector<8x2xf32>
    %57 = arith.cmpf oeq, %55, %56 : vector<8x2xf32>
    %58 = arith.ori %54, %57 : vector<8x2xi1>
    %cst_13 = arith.constant 0.000000e+00 : f32
    %59 = vector.broadcast %cst_13 : f32 to vector<8x2xf32>
    %60 = arith.select %58, %59, %53 : vector<8x2xi1>, vector<8x2xf32>
    %61 = arith.addf %1, %60 : vector<8x2xf32>
    %62 = arith.cmpf one, %61, %61 : vector<8x2xf32>
    %63 = math.absf %61 : vector<8x2xf32>
    %cst_14 = arith.constant 0x7F800000 : f32
    %64 = vector.broadcast %cst_14 : f32 to vector<8x2xf32>
    %65 = arith.cmpf oeq, %63, %64 : vector<8x2xf32>
    %66 = arith.ori %62, %65 : vector<8x2xi1>
    %67 = arith.select %66, %1, %61 : vector<8x2xi1>, vector<8x2xf32>
    %68 = vector.broadcast %4 : vector<1x2xf32> to vector<8x2xf32>
    %69 = arith.mulf %68, %51 : vector<8x2xf32>
    %70 = arith.cmpf one, %69, %69 : vector<8x2xf32>
    %71 = math.absf %69 : vector<8x2xf32>
    %cst_15 = arith.constant 0x7F800000 : f32
    %72 = vector.broadcast %cst_15 : f32 to vector<8x2xf32>
    %73 = arith.cmpf oeq, %71, %72 : vector<8x2xf32>
    %74 = arith.ori %70, %73 : vector<8x2xi1>
    %cst_16 = arith.constant 0.000000e+00 : f32
    %75 = vector.broadcast %cst_16 : f32 to vector<8x2xf32>
    %76 = arith.select %74, %75, %69 : vector<8x2xi1>, vector<8x2xf32>
    %77 = arith.addf %3, %76 : vector<8x2xf32>
    %78 = arith.cmpf one, %77, %77 : vector<8x2xf32>
    %79 = math.absf %77 : vector<8x2xf32>
    %cst_17 = arith.constant 0x7F800000 : f32
    %80 = vector.broadcast %cst_17 : f32 to vector<8x2xf32>
    %81 = arith.cmpf oeq, %79, %80 : vector<8x2xf32>
    %82 = arith.ori %78, %81 : vector<8x2xi1>
    %83 = arith.select %82, %3, %77 : vector<8x2xi1>, vector<8x2xf32>
    %84 = vector.shape_cast %67 : vector<8x2xf32> to vector<8x1x2xf32>
    %85 = vector.shape_cast %67 : vector<8x2xf32> to vector<1x8x2xf32>
    %86 = vector.broadcast %84 : vector<8x1x2xf32> to vector<8x8x2xf32>
    %87 = vector.broadcast %85 : vector<1x8x2xf32> to vector<8x8x2xf32>
    %88 = arith.mulf %86, %87 : vector<8x8x2xf32>
    %89 = arith.mulf %67, %67 : vector<8x2xf32>
    %90 = vector.shape_cast %83 : vector<8x2xf32> to vector<8x1x2xf32>
    %91 = vector.shape_cast %83 : vector<8x2xf32> to vector<1x8x2xf32>
    %92 = vector.broadcast %90 : vector<8x1x2xf32> to vector<8x8x2xf32>
    %93 = vector.broadcast %91 : vector<1x8x2xf32> to vector<8x8x2xf32>
    %94 = arith.mulf %92, %93 : vector<8x8x2xf32>
    %95 = arith.addf %88, %94 : vector<8x8x2xf32>
    %96 = arith.mulf %83, %83 : vector<8x2xf32>
    %97 = arith.addf %89, %96 : vector<8x2xf32>
    %98 = math.sqrt %97 : vector<8x2xf32>
    %99 = vector.shape_cast %98 : vector<8x2xf32> to vector<8x1x2xf32>
    %100 = vector.shape_cast %98 : vector<8x2xf32> to vector<1x8x2xf32>
    %101 = vector.broadcast %99 : vector<8x1x2xf32> to vector<8x8x2xf32>
    %102 = vector.broadcast %100 : vector<1x8x2xf32> to vector<8x8x2xf32>
    %103 = arith.mulf %101, %102 : vector<8x8x2xf32>
    %cst_18 = arith.constant 9.99999997E-7 : f32
    %104 = vector.broadcast %cst_18 : f32 to vector<8x8x2xf32>
    %105 = arith.maximumf %103, %104 : vector<8x8x2xf32>
    %106 = arith.divf %95, %105 : vector<8x8x2xf32>
    %cst_19 = arith.constant 1.000000e+00 : f32
    %107 = vector.broadcast %cst_19 : f32 to vector<8x8x2xf32>
    %108 = arith.addf %106, %107 : vector<8x8x2xf32>
    %cst_20 = arith.constant 5.000000e-01 : f32
    %109 = vector.broadcast %cst_20 : f32 to vector<8x8x2xf32>
    %110 = arith.mulf %108, %109 : vector<8x8x2xf32>
    %111 = arith.mulf %110, %9 : vector<8x8x2xf32>
    %cst_21 = arith.constant dense<0.000000e+00> : vector<8x2xf32>
    %112 = vector.multi_reduction <add>, %111, %cst_21 [1] : vector<8x8x2xf32> to vector<8x2xf32>
    %113 = vector.shape_cast %112 : vector<8x2xf32> to vector<8x1x2xf32>
    %cst_22 = arith.constant 9.99999997E-7 : f32
    %114 = vector.broadcast %cst_22 : f32 to vector<8x1x2xf32>
    %115 = arith.maximumf %113, %114 : vector<8x1x2xf32>
    %116 = vector.broadcast %115 : vector<8x1x2xf32> to vector<8x8x2xf32>
    %117 = arith.divf %111, %116 : vector<8x8x2xf32>
    %118 = vector.shape_cast %67 : vector<8x2xf32> to vector<1x8x2xf32>
    %119 = vector.broadcast %118 : vector<1x8x2xf32> to vector<8x8x2xf32>
    %120 = arith.mulf %117, %119 : vector<8x8x2xf32>
    %cst_23 = arith.constant dense<0.000000e+00> : vector<8x2xf32>
    %121 = vector.multi_reduction <add>, %120, %cst_23 [1] : vector<8x8x2xf32> to vector<8x2xf32>
    %122 = vector.shape_cast %83 : vector<8x2xf32> to vector<1x8x2xf32>
    %123 = vector.broadcast %122 : vector<1x8x2xf32> to vector<8x8x2xf32>
    %124 = arith.mulf %117, %123 : vector<8x8x2xf32>
    %cst_24 = arith.constant dense<0.000000e+00> : vector<8x2xf32>
    %125 = vector.multi_reduction <add>, %124, %cst_24 [1] : vector<8x8x2xf32> to vector<8x2xf32>
    %126 = vector.broadcast %4 : vector<1x2xf32> to vector<8x2xf32>
    %127 = arith.mulf %126, %121 : vector<8x2xf32>
    %128 = arith.cmpf one, %127, %127 : vector<8x2xf32>
    %129 = math.absf %127 : vector<8x2xf32>
    %cst_25 = arith.constant 0x7F800000 : f32
    %130 = vector.broadcast %cst_25 : f32 to vector<8x2xf32>
    %131 = arith.cmpf oeq, %129, %130 : vector<8x2xf32>
    %132 = arith.ori %128, %131 : vector<8x2xi1>
    %cst_26 = arith.constant 0.000000e+00 : f32
    %133 = vector.broadcast %cst_26 : f32 to vector<8x2xf32>
    %134 = arith.select %132, %133, %127 : vector<8x2xi1>, vector<8x2xf32>
    %135 = arith.addf %60, %134 : vector<8x2xf32>
    %cst_27 = arith.constant 5.000000e-01 : f32
    %136 = vector.broadcast %cst_27 : f32 to vector<8x2xf32>
    %137 = arith.mulf %136, %135 : vector<8x2xf32>
    %138 = arith.addf %1, %137 : vector<8x2xf32>
    %139 = vector.broadcast %4 : vector<1x2xf32> to vector<8x2xf32>
    %140 = arith.mulf %139, %125 : vector<8x2xf32>
    %141 = arith.cmpf one, %140, %140 : vector<8x2xf32>
    %142 = math.absf %140 : vector<8x2xf32>
    %cst_28 = arith.constant 0x7F800000 : f32
    %143 = vector.broadcast %cst_28 : f32 to vector<8x2xf32>
    %144 = arith.cmpf oeq, %142, %143 : vector<8x2xf32>
    %145 = arith.ori %141, %144 : vector<8x2xi1>
    %cst_29 = arith.constant 0.000000e+00 : f32
    %146 = vector.broadcast %cst_29 : f32 to vector<8x2xf32>
    %147 = arith.select %145, %146, %140 : vector<8x2xi1>, vector<8x2xf32>
    %148 = arith.addf %76, %147 : vector<8x2xf32>
    %cst_30 = arith.constant 5.000000e-01 : f32
    %149 = vector.broadcast %cst_30 : f32 to vector<8x2xf32>
    %150 = arith.mulf %149, %148 : vector<8x2xf32>
    %151 = arith.addf %3, %150 : vector<8x2xf32>
    %152 = arith.mulf %138, %138 : vector<8x2xf32>
    %153 = arith.mulf %151, %151 : vector<8x2xf32>
    %154 = arith.addf %152, %153 : vector<8x2xf32>
    %155 = math.sqrt %154 : vector<8x2xf32>
    %cst_31 = arith.constant 9.99999997E-7 : f32
    %156 = vector.broadcast %cst_31 : f32 to vector<8x2xf32>
    %157 = arith.maximumf %155, %156 : vector<8x2xf32>
    %cst_32 = arith.constant dense<0.000000e+00> : vector<8x2xf32>
    %158 = vector.multi_reduction <add>, %43, %cst_32 [1] : vector<8x8x2xf32> to vector<8x2xf32>
    %cst_33 = arith.constant 0.00999999977 : f32
    %159 = vector.broadcast %cst_33 : f32 to vector<8x2xf32>
    %160 = arith.mulf %158, %159 : vector<8x2xf32>
    %161 = arith.addf %157, %160 : vector<8x2xf32>
    %cst_34 = arith.constant 1.000000e-01 : f32
    %cst_35 = arith.constant 2.000000e+00 : f32
    %162 = vector.broadcast %cst_34 : f32 to vector<8x2xf32>
    %163 = arith.maximumf %162, %161 : vector<8x2xf32>
    %164 = vector.broadcast %cst_35 : f32 to vector<8x2xf32>
    %165 = arith.minimumf %164, %163 : vector<8x2xf32>
    %166 = arith.divf %165, %157 : vector<8x2xf32>
    %167 = arith.mulf %138, %166 : vector<8x2xf32>
    %168 = arith.mulf %151, %166 : vector<8x2xf32>
    %169 = arith.cmpf one, %167, %167 : vector<8x2xf32>
    %170 = math.absf %167 : vector<8x2xf32>
    %cst_36 = arith.constant 0x7F800000 : f32
    %171 = vector.broadcast %cst_36 : f32 to vector<8x2xf32>
    %172 = arith.cmpf oeq, %170, %171 : vector<8x2xf32>
    %173 = arith.ori %169, %172 : vector<8x2xi1>
    %174 = arith.cmpf one, %168, %168 : vector<8x2xf32>
    %175 = math.absf %168 : vector<8x2xf32>
    %cst_37 = arith.constant 0x7F800000 : f32
    %176 = vector.broadcast %cst_37 : f32 to vector<8x2xf32>
    %177 = arith.cmpf oeq, %175, %176 : vector<8x2xf32>
    %178 = arith.ori %174, %177 : vector<8x2xi1>
    %179 = arith.ori %173, %178 : vector<8x2xi1>
    %180 = arith.extui %179 : vector<8x2xi1> to vector<8x2xi32>
    %181 = arith.sitofp %180 : vector<8x2xi32> to vector<8x2xf32>
    %cst_38 = arith.constant dense<0xFF800000> : vector<2xf32>
    %182 = vector.multi_reduction <maximumf>, %181, %cst_38 [0] : vector<8x2xf32> to vector<2xf32>
    %183 = vector.shape_cast %182 : vector<2xf32> to vector<1x2xf32>
    %c0_39 = arith.constant 0 : index
    %c0_40 = arith.constant 0 : index
    %184 = vector.load %arg5[%c0_39, %c0_40] : memref<1x2xf32, #tpu.memory_space<vmem>>, vector<1x2xf32>
    tpu.vector_store %arg5[%c0_39, %c0_40], %183 {strides = array<i32>} : memref<1x2xf32, #tpu.memory_space<vmem>>, vector<1x2xf32>,
    %185 = arith.select %173, %1, %167 : vector<8x2xi1>, vector<8x2xf32>
    %c0_41 = arith.constant 0 : index
    %c0_42 = arith.constant 0 : index
    %c0_43 = arith.constant 0 : index
    %186 = vector.load %arg3[%c0_41, %c0_42, %c0_43] : memref<2x8x2xf32, #tpu.memory_space<vmem>>, vector<1x8x2xf32>
    %187 = vector.shape_cast %186 : vector<1x8x2xf32> to vector<8x2xf32>
    %188 = vector.shape_cast %185 : vector<8x2xf32> to vector<1x8x2xf32>
    tpu.vector_store %arg3[%c0_41, %c0_42, %c0_43], %188 {strides = array<i32>} : memref<2x8x2xf32, #tpu.memory_space<vmem>>, vector<1x8x2xf32>,
    %189 = arith.select %178, %3, %168 : vector<8x2xi1>, vector<8x2xf32>
    %c1_44 = arith.constant 1 : index
    %c0_45 = arith.constant 0 : index
    %c0_46 = arith.constant 0 : index
    %190 = vector.load %arg3[%c1_44, %c0_45, %c0_46] : memref<2x8x2xf32, #tpu.memory_space<vmem>>, vector<1x8x2xf32>
    %191 = vector.shape_cast %190 : vector<1x8x2xf32> to vector<8x2xf32>
    %192 = vector.shape_cast %189 : vector<8x2xf32> to vector<1x8x2xf32>
    tpu.vector_store %arg3[%c1_44, %c0_45, %c0_46], %192 {strides = array<i32>} : memref<2x8x2xf32, #tpu.memory_space<vmem>>, vector<1x8x2xf32>,
    %c0_47 = arith.constant 0 : index
    %c0_48 = arith.constant 0 : index
    %c0_49 = arith.constant 0 : index
    %193 = vector.load %arg4[%c0_47, %c0_48, %c0_49] : memref<8x8x2xf32, #tpu.memory_space<vmem>>, vector<8x8x2xf32>
    tpu.vector_store %arg4[%c0_47, %c0_48, %c0_49], %43 {strides = array<i32>} : memref<8x8x2xf32, #tpu.memory_space<vmem>>, vector<8x8x2xf32>,
    return
  }
  func.func @transform_0(%arg0: i32) -> (i32, i32) {
    %c0_i32 = arith.constant 0 : i32
    %c0_i32_0 = arith.constant 0 : i32
    %c0_i32_1 = arith.constant 0 : i32
    return %c0_i32, %c0_i32_0 : i32, i32
  }
  func.func @transform_1(%arg0: i32) -> (i32, i32, i32) {
    %c0_i32 = arith.constant 0 : i32
    %c0_i32_0 = arith.constant 0 : i32
    %c0_i32_1 = arith.constant 0 : i32
    %c0_i32_2 = arith.constant 0 : i32
    return %c0_i32, %c0_i32_0, %c0_i32_1 : i32, i32, i32
  }
  func.func @transform_2(%arg0: i32) -> (i32, i32, i32) {
    %c0_i32 = arith.constant 0 : i32
    %c0_i32_0 = arith.constant 0 : i32
    %c0_i32_1 = arith.constant 0 : i32
    %c0_i32_2 = arith.constant 0 : i32
    return %c0_i32, %c0_i32_0, %c0_i32_1 : i32, i32, i32
  }
  func.func @transform_3(%arg0: i32) -> (i32, i32, i32) {
    %c0_i32 = arith.constant 0 : i32
    %c0_i32_0 = arith.constant 0 : i32
    %c0_i32_1 = arith.constant 0 : i32
    %c0_i32_2 = arith.constant 0 : i32
    return %c0_i32, %c0_i32_0, %c0_i32_1 : i32, i32, i32
  }
  func.func @transform_4(%arg0: i32) -> (i32, i32) {
    %c0_i32 = arith.constant 0 : i32
    %c0_i32_0 = arith.constant 0 : i32
    %c0_i32_1 = arith.constant 0 : i32
    return %c0_i32, %c0_i32_0 : i32, i32
  }
}

</mosaic_0001>

<bundles_post_ra>
// kernel: tpu_custom_call.1
= control target key start
LH: loop header
LB: loop body
LE: loop exit
PB: predicated region body
PF: predicated region fallthrough
CT: control target
= control target key end

     0   :  { %10 = vsyncpa [#allocation3], 0  ;;  %v19_v3 = vlaneseq  ;;  %v2897_v17 = vmov 0.0   ;;  %s1618_s22 = smov [#allocation2]   ;;  %s2884_s0 = inlined_call_operand.vmem [shape: f32[1,2], index: 0, kind: input, shape index: {}]   ;;  %s2885_s1 = inlined_call_operand.vmem [shape: f32[2,8,2], index: 1, kind: input, shape index: {}]   ;;  %s2886_s2 = inlined_call_operand.vmem [shape: f32[2,8,2], index: 2, kind: output, shape index: {0}]   ;;  %s2887_s3 = inlined_call_operand.vmem [shape: f32[8,8,2], index: 3, kind: output, shape index: {1}]   ;;  %s2888_s4 = inlined_call_operand.hbm [shape: f32[1,2], index: 4, kind: output, shape index: {2}]  }
   0x1   :  { %v1647_v0 = vld [vmem:[%s2885_s1] sm:$0xff]  ;;  %v1652_v1 = vld [vmem:[%s2885_s1 + $0x8] sm:$0xff]  ;;  %s1486_s23 = sshll.u32 %s1618_s22, 4  ;;  %s1488_s26 = sshll.u32 %s2888_s4, 4  ;;  %s1487_s23 = int_to_ptr.vmem [resolvable:$true] %s1486_s23  ;;  %s1489_s26 = int_to_ptr.hbm [resolvable:$true] %s1488_s26 }
   0x2   :  { %v77_v2 = vmul.f32 %v1647_v0, %v1647_v0  ;;  %v118_v4 = vmul.f32 %v1652_v1, %v1652_v1  ;;  %v20_v6 = vshrl.u32 %v19_v3, 7  ;;  %v46_v7 = vrot.slane %v1647_v0, 1 }
   0x3   :  { %v47_v8 = vrot.slane %v1647_v0, 2  ;;  %v48_v9 = vrot.slane %v1647_v0, 3  ;;  %v49_v10 = vrot.slane %v1647_v0, 4  ;;  %v50_v11 = vrot.slane %v1647_v0, 5 }
   0x4   :  { %v1658_v5 = vadd.f32 %v118_v4, %v77_v2  ;;  %vm21_vm0 = vcmp.le.s32.totalorder %v20_v6, 0  ;;  %v51_v12 = vrot.slane %v1647_v0, 6  ;;  %v52_v13 = vrot.slane %v1647_v0, 7 }
   0x5   :  { %vm22_vm1 = vcmp.le.s32.totalorder %v20_v6, 1  ;;  %vm23_vm2 = vcmp.le.s32.totalorder %v20_v6, 2  ;;  %vm24_vm3 = vcmp.le.s32.totalorder %v20_v6, 3  ;;  %vm25_vm4 = vcmp.le.s32.totalorder %v20_v6, 4 }
   0x6   :  { %1514 = vrsqrt.f32 %v1658_v5  ;;  %vm26_vm5 = vcmp.le.s32.totalorder %v20_v6, 5  ;;  %vm27_vm6 = vcmp.le.s32.totalorder %v20_v6, 6  ;;  %v53_v15 = vperm.slane %v1647_v0, 0 }
   0x7   :  { %v54_v16 = vperm.slane %v46_v7, 0  ;;  %v1670_v18 = vsel %vm21_vm0, 1.0, %v2897_v17  ;;  %v55_v19 = vperm.slane %v47_v8, 0  ;;  %v56_v20 = vperm.slane %v48_v9, 0 }
   0x8   :  { %v1674_v22 = vsel %vm22_vm1, 1.0, %v2897_v17  ;;  %v1677_v23 = vsel %vm23_vm2, 1.0, %v2897_v17  ;;  %v1680_v24 = vsel %vm24_vm3, 1.0, %v2897_v17  ;;  %v1683_v25 = vsel %vm25_vm4, 1.0, %v2897_v17 }
   0x9   :  { %v1686_v26 = vsel %vm26_vm5, 1.0, %v2897_v17  ;;  %v1689_v27 = vsel %vm27_vm6, 1.0, %v2897_v17  ;;  %v57_v28 = vperm.slane %v49_v10, 0  ;;  %v58_v30 = vperm.slane %v50_v11, 0 }
   0xa   :  { %v79_v31 = vrot.slane %v1652_v1, 1  ;;  %v80_v32 = vrot.slane %v1652_v1, 2  ;;  %v81_v33 = vrot.slane %v1652_v1, 3  ;;  %v82_v34 = vrot.slane %v1652_v1, 4 }
   0xb   :  { %v83_v35 = vrot.slane %v1652_v1, 5  ;;  %v84_v36 = vrot.slane %v1652_v1, 6  ;;  %v59_v38 = vperm.slane %v51_v12, 0  ;;  %v60_v39 = vperm.slane %v52_v13, 0 }
   0xc   :  { %v1515_v14 = vpop.eup %1514  ;;  %v85_v40 = vrot.slane %v1652_v1, 7  ;;  %v86_v41 = vperm.slane %v1652_v1, 0  ;;  %v69_v42 = vmul.f32 %v53_v15, %v1647_v0  ;;  %v70_v43 = vmul.f32 %v54_v16, %v1647_v0 }
   0xd   :  { %v121_v21 = vmul.f32 %v1515_v14, %v1658_v5  ;;  %v71_v44 = vmul.f32 %v55_v19, %v1647_v0  ;;  %v72_v46 = vmul.f32 %v56_v20, %v1647_v0  ;;  %v87_v47 = vperm.slane %v79_v31, 0 }
   0xe   :  { %v88_v48 = vperm.slane %v80_v32, 0  ;;  %v89_v49 = vperm.slane %v81_v33, 0  ;;  %v90_v50 = vperm.slane %v82_v34, 0  ;;  %v91_v51 = vperm.slane %v83_v35, 0 }
   0xf   :  { %v122_v29 = vmul.f32 %v1515_v14, %v121_v21  ;;  %v92_v52 = vperm.slane %v84_v36, 0  ;;  %v93_v54 = vperm.slane %v85_v40, 0  ;;  %v102_v55 = vmul.f32 %v1652_v1, %v86_v41 }
  0x10   :  { %vm127_vm7 = vcmp.eq.f32.partialorder %v1658_v5, inf  ;;  %v130_v56 = vand.u32 2147483648, %v1658_v5  ;;  %v73_v57 = vmul.f32 %v57_v28, %v1647_v0  ;;  %v74_v58 = vmul.f32 %v58_v30, %v1647_v0 }
  0x11   :  { %v123_v37 = vmul.f32 0.5, %v122_v29  ;;  %vm129_vm8 = vcmp.eq.f32.partialorder %v1658_v5, 0.0  ;;  %v75_v60 = vmul.f32 %v59_v38, %v1647_v0  ;;  %v1712_v61 = vmul.f32 %v60_v39, %v1647_v0 }
  0x12   :  { %v103_v62 = vmul.f32 %v1652_v1, %v87_v47  ;;  %v104_v63 = vmul.f32 %v1652_v1, %v88_v48  ;;  %v105_v2 = vmul.f32 %v1652_v1, %v89_v49  ;;  %v106_v3 = vmul.f32 %v1652_v1, %v90_v50 }
  0x13   :  { %v124_v45 = vsub.f32 1.5, %v123_v37  ;;  %v107_v4 = vmul.f32 %v1652_v1, %v91_v51  ;;  %v108_v7 = vmul.f32 %v1652_v1, %v92_v52  ;;  %v1722_v8 = vmul.f32 %v1652_v1, %v93_v54 }
  0x14   :  { %v1724_v9 = vadd.f32 %v102_v55, %v69_v42  ;;  %v1726_v33 = vadd.f32 %v103_v62, %v70_v43  ;;  %v1728_v37 = vadd.f32 %v104_v63, %v71_v44  ;;  %v1734_v48 = vadd.f32 %v105_v2, %v72_v46 }
  0x15   :  { %v125_v53 = vmul.f32 %v1515_v14, %v124_v45  ;;  %v1736_v49 = vadd.f32 %v106_v3, %v73_v57  ;;  %v1738_v43 = vadd.f32 %v107_v4, %v74_v58  ;;  %v1740_v50 = vadd.f32 %v108_v7, %v75_v60 }
  0x17   :  { %v126_v59 = vmul.f32 %v125_v53, %v1658_v5 }
  0x19   :  { %v128_v6 = vsel %vm127_vm7, %v1658_v5, %v126_v59 }
  0x1a   :  { %v131_v10 = vsel %vm129_vm8, %v130_v56, %v128_v6 }
  0x1b   :  { %v133_v11 = vrot.slane %v131_v10, 1  ;;  %v134_v12 = vrot.slane %v131_v10, 2  ;;  %v135_v13 = vrot.slane %v131_v10, 3  ;;  %v136_v14 = vrot.slane %v131_v10, 4 }
  0x1c   :  { %v137_v15 = vrot.slane %v131_v10, 5  ;;  %v138_v16 = vrot.slane %v131_v10, 6  ;;  %v139_v19 = vrot.slane %v131_v10, 7  ;;  %v140_v20 = vperm.slane %v131_v10, 0 }
  0x1d   :  { %v141_v21 = vperm.slane %v133_v11, 0  ;;  %v142_v28 = vperm.slane %v134_v12, 0  ;;  %v143_v29 = vperm.slane %v135_v13, 0  ;;  %v144_v5 = vperm.slane %v136_v14, 0 }
  0x1e   :  { %v145_v30 = vperm.slane %v137_v15, 0  ;;  %v146_v31 = vperm.slane %v138_v16, 0  ;;  %v147_v32 = vperm.slane %v139_v19, 0  ;;  %v156_v1 = vmul.f32 %v140_v20, %v131_v10 }
  0x1f   :  { %v157_v34 = vmul.f32 %v141_v21, %v131_v10  ;;  %v158_v35 = vmul.f32 %v142_v28, %v131_v10  ;;  %v159_v36 = vmul.f32 %v143_v29, %v131_v10  ;;  %v160_v38 = vmul.f32 %v144_v5, %v131_v10 }
  0x20   :  { %v161_v39 = vmul.f32 %v145_v30, %v131_v10  ;;  %v164_v40 = vmax.f32 %v156_v1, 1e-06  ;;  %v162_v41 = vmul.f32 %v146_v31, %v131_v10  ;;  %v163_v42 = vmul.f32 %v147_v32, %v131_v10 }
  0x21   :  { %v1730_v45 = vmax.f32 %v157_v34, 1e-06  ;;  %v1732_v47 = vmax.f32 %v158_v35, 1e-06  ;;  %v1742_v44 = vmax.f32 %v159_v36, 1e-06 }
  0x22   :  { %1516 = vrcp.f32 %v164_v40  ;;  %v181_v51 = vand.u32 2147483647, %v164_v40  ;;  %v183_v52 = vand.u32 2147483648, %v164_v40  ;;  %v1744_v53 = vmax.f32 %v160_v38, 1e-06 }
  0x23   :  { %v1746_v54 = vmax.f32 %v161_v39, 1e-06  ;;  %1518 = vrcp.f32 %v1730_v45  ;;  %v198_v46 = vand.u32 2147483648, %v1730_v45  ;;  %v1750_v55 = vmax.f32 %v162_v41, 1e-06 }
  0x24   :  { %v1752_v56 = vmax.f32 %v163_v42, 1e-06  ;;  %v196_v57 = vand.u32 2147483647, %v1730_v45  ;;  %1520 = vrcp.f32 %v1732_v47  ;;  %vm177_vm9 = vweird.f32 %v164_v40 }
  0x25   :  { %vm192_vm10 = vweird.f32 %v1730_v45  ;;  %v211_v58 = vand.u32 2147483647, %v1732_v47  ;;  %v213_v59 = vand.u32 2147483648, %v1732_v47  ;;  %vm1759_vm11 = vcmp.eq.f32.partialorder %v181_v51, 8.507059e+37 }
  0x26   :  { %v184_v62 = vor.u32 1.1754944e-38, %v183_v52  ;;  %1522 = vrcp.f32 %v1742_v44  ;;  %v228_v63 = vand.u32 2147483648, %v1742_v44  ;;  %v1765_v3 = vor.u32 1.1754944e-38, %v198_v46 }
  0x27   :  { %vm207_vm12 = vweird.f32 %v1732_v47  ;;  %v226_v4 = vand.u32 2147483647, %v1742_v44  ;;  %1524 = vrcp.f32 %v1744_v53  ;;  %vm1770_vm13 = vcmp.eq.f32.partialorder %v196_v57, 8.507059e+37 }
  0x28   :  { %v1517_v2 = vpop.eup %1516  ;;  %v214_v10 = vor.u32 1.1754944e-38, %v213_v59  ;;  %vm222_vm14 = vweird.f32 %v1742_v44  ;;  %vm1776_vm1 = vcmp.eq.f32.partialorder %v211_v58, 8.507059e+37  ;;  %v241_v13 = vand.u32 2147483647, %v1744_v53 }
  0x29   :  { %v173_v6 = vmul.f32 %v1517_v2, %v164_v40  ;;  %v1519_v11 = vpop.eup %1518  ;;  %vm178_vm0 = vweird.f32 %v1517_v2  ;;  %v243_v14 = vand.u32 2147483648, %v1744_v53  ;;  %1526 = vrcp.f32 %v1746_v54 }
  0x2a   :  { %v1521_v15 = vpop.eup %1520  ;;  %v188_v19 = vmul.f32 %v1519_v11, %v1730_v45  ;;  %v229_v20 = vor.u32 1.1754944e-38, %v228_v63  ;;  %v256_v21 = vand.u32 2147483647, %v1746_v54  ;;  %vm193_vm2 = vweird.f32 %v1519_v11  ;;  %vm1798_vm7 = vmor %vm177_vm9, %vm178_vm0 }
  0x2b   :  { %v174_v16 = vsub.f32 1.0, %v173_v6  ;;  %v203_v28 = vmul.f32 %v1521_v15, %v1732_v47  ;;  %vm208_vm3 = vweird.f32 %v1521_v15  ;;  %vm1786_vm4 = vcmp.eq.f32.partialorder %v226_v4, 8.507059e+37  ;;  %vm1812_vm9 = vmor %vm192_vm10, %vm193_vm2 }
  0x2c   :  { %v1523_v5 = vpop.eup %1522  ;;  %v189_v31 = vsub.f32 1.0, %v188_v19  ;;  %vm1791_vm6 = vcmp.eq.f32.partialorder %v241_v13, 8.507059e+37  ;;  %v258_v1 = vand.u32 2147483648, %v1746_v54  ;;  %v244_v39 = vor.u32 1.1754944e-38, %v243_v14  ;;  %vm1821_vm15 = vmor %vm207_vm12, %vm208_vm3 }
  0x2d   :  { %v175_v30 = vmul.f32 %v1517_v2, %v174_v16  ;;  %v1525_v34 = vpop.eup %1524  ;;  %v204_v36 = vsub.f32 1.0, %v203_v28  ;;  %v218_v38 = vmul.f32 %v1523_v5, %v1742_v44  ;;  %1528 = vrcp.f32 %v1750_v55 }
  0x2e   :  { %v190_v42 = vmul.f32 %v1519_v11, %v189_v31  ;;  %vm223_vm8 = vweird.f32 %v1523_v5  ;;  %v233_v51 = vmul.f32 %v1525_v34, %v1744_v53  ;;  %vm1805_vm5 = vcmp.eq.f32.partialorder %v256_v21, 8.507059e+37 }
  0x2f   :  { %v176_v41 = vadd.f32 %v1517_v2, %v175_v30  ;;  %v1527_v40 = vpop.eup %1526  ;;  %v205_v57 = vmul.f32 %v1521_v15, %v204_v36  ;;  %v219_v58 = vsub.f32 1.0, %v218_v38  ;;  %vm238_vm0 = vweird.f32 %v1525_v34  ;;  %vm1834_vm12 = vmor %vm222_vm14, %vm223_vm8 }
  0x30   :  { %v259_v59 = vor.u32 1.1754944e-38, %v258_v1  ;;  %v191_v4 = vadd.f32 %v1519_v11, %v190_v42  ;;  %v234_v45 = vsub.f32 1.0, %v233_v51  ;;  %v248_v13 = vmul.f32 %v1527_v40, %v1746_v54 }
  0x31   :  { %v180_v63 = vsel %vm1798_vm7, %v1517_v2, %v176_v41  ;;  %v206_v16 = vadd.f32 %v1521_v15, %v205_v57  ;;  %v220_v19 = vmul.f32 %v1523_v5, %v219_v58  ;;  %vm267_vm10 = vweird.f32 %v1750_v55 }
  0x32   :  { %v185_v14 = vsel %vm1759_vm11, %v184_v62, %v180_v63  ;;  %v195_v2 = vsel %vm1812_vm9, %v1519_v11, %v191_v4  ;;  %v235_v21 = vmul.f32 %v1525_v34, %v234_v45  ;;  %v249_v28 = vsub.f32 1.0, %v248_v13 }
  0x33   :  { %vm253_vm2 = vweird.f32 %v1527_v40  ;;  %v1529_v30 = vpop.eup %1528  ;;  %v186_v60 = vmul.f32 %v185_v14, %v1724_v9  ;;  %v200_v62 = vsel %vm1770_vm13, %v1765_v3, %v195_v2  ;;  %v210_v11 = vsel %vm1821_vm15, %v1521_v15, %v206_v16 }
  0x34   :  { %v221_v31 = vadd.f32 %v1523_v5, %v220_v19  ;;  %vm2921_vm11 = vweird.f32 %v1744_v53  ;;  %v215_v1 = vsel %vm1776_vm1, %v214_v10, %v210_v11  ;;  %v236_v35 = vadd.f32 %v1525_v34, %v235_v21 }
  0x35   :  { %vm1847_vm14 = vmor %vm2921_vm11, %vm238_vm0  ;;  %v250_v9 = vmul.f32 %v1527_v40, %v249_v28  ;;  %v271_v36 = vand.u32 2147483647, %v1750_v55  ;;  %v201_v3 = vmul.f32 %v200_v62, %v1726_v33  ;;  %v216_v7 = vmul.f32 %v215_v1, %v1728_v37 }
  0x36   :  { %v225_v15 = vsel %vm1834_vm12, %v1523_v5, %v221_v31  ;;  %vm2924_vm13 = vweird.f32 %v1746_v54  ;;  %v263_v53 = vmul.f32 %v1529_v30, %v1750_v55  ;;  %v240_v10 = vsel %vm1847_vm14, %v1525_v34, %v236_v35 }
  0x37   :  { %vm254_vm15 = vmor %vm2924_vm13, %vm253_vm2  ;;  %v230_v12 = vsel %vm1786_vm4, %v229_v20, %v225_v15  ;;  %v251_v38 = vadd.f32 %v1527_v40, %v250_v9  ;;  %vm268_vm1 = vweird.f32 %v1529_v30  ;;  %v245_v37 = vsel %vm1791_vm6, %v244_v39, %v240_v10 }
  0x38   :  { %v231_v33 = vmul.f32 %v230_v12, %v1734_v48  ;;  %v264_v41 = vsub.f32 1.0, %v263_v53  ;;  %v273_v5 = vand.u32 2147483648, %v1750_v55  ;;  %v1871_v54 = vadd.f32 %v1722_v8, %v1712_v61  ;;  %vm1885_vm4 = vmor %vm267_vm10, %vm268_vm1 }
  0x39   :  { %v246_v29 = vmul.f32 %v245_v37, %v1736_v49  ;;  %v255_v20 = vsel %vm254_vm15, %v1527_v40, %v251_v38  ;;  %1530 = vrcp.f32 %v1752_v56  ;;  %vm1877_vm3 = vcmp.eq.f32.partialorder %v271_v36, 8.507059e+37 }
  0x3a   :  { %v260_v34 = vsel %vm1805_vm5, %v259_v59, %v255_v20  ;;  %v265_v42 = vmul.f32 %v1529_v30, %v264_v41  ;;  %v286_v32 = vand.u32 2147483647, %v1752_v56  ;;  %v274_v8 = vor.u32 1.1754944e-38, %v273_v5 }
  0x3b   :  { %v261_v39 = vmul.f32 %v260_v34, %v1738_v43  ;;  %v292_v49 = vadd.f32 1.0, %v186_v60  ;;  %v293_v51 = vadd.f32 1.0, %v201_v3  ;;  %v288_v40 = vand.u32 2147483648, %v1752_v56 }
  0x3c   :  { %v266_v52 = vadd.f32 %v1529_v30, %v265_v42  ;;  %v294_v46 = vadd.f32 1.0, %v216_v7  ;;  %v295_v57 = vadd.f32 1.0, %v231_v33  ;;  %vm282_vm5 = vweird.f32 %v1752_v56 }
  0x3d   :  { %v296_v58 = vadd.f32 1.0, %v246_v29  ;;  %v297_v59 = vadd.f32 1.0, %v261_v39  ;;  %v300_v63 = vmul.f32 0.5, %v292_v49  ;;  %vm1893_vm6 = vcmp.eq.f32.partialorder %v286_v32, 8.507059e+37 }
  0x3e   :  { %v270_v43 = vsel %vm1885_vm4, %v1529_v30, %v266_v52  ;;  %v301_v4 = vmul.f32 0.5, %v293_v51  ;;  %v302_v6 = vmul.f32 0.5, %v294_v46  ;;  %v303_v45 = vmul.f32 0.5, %v295_v57 }
  0x3f   :  { %v1531_v13 = vpop.eup %1530  ;;  %v275_v14 = vsel %vm1877_vm3, %v274_v8, %v270_v43  ;;  %v304_v16 = vmul.f32 0.5, %v296_v58  ;;  %v305_v19 = vmul.f32 0.5, %v297_v59  ;;  %v1900_v2 = vmul.f32 %v1670_v18, %v300_v63 }
  0x40   :  { %v276_v47 = vmul.f32 %v275_v14, %v1740_v50  ;;  %v278_v21 = vmul.f32 %v1531_v13, %v1752_v56  ;;  %v289_v28 = vor.u32 1.1754944e-38, %v288_v40  ;;  %v1905_v30 = vmul.f32 %v1674_v22, %v301_v4 }
  0x41   :  { %v1908_v60 = vmul.f32 %v1677_v23, %v302_v6  ;;  %v1911_v62 = vmul.f32 %v1680_v24, %v303_v45  ;;  %v1914_v11 = vmul.f32 %v1683_v25, %v304_v16  ;;  %v1917_v31 = vmul.f32 %v1686_v26, %v305_v19 }
  0x42   :  { %v279_v44 = vsub.f32 1.0, %v278_v21  ;;  %vm283_vm7 = vweird.f32 %v1531_v13  ;;  %v298_v50 = vadd.f32 1.0, %v276_v47  ;;  %vm2896_vm8 = vcmask 15360  }
  0x43   :  { %v317_v1 = vsel %vm2896_vm8, %v1900_v2, 0.0  ;;  %v324_v35 = vsel %vm2896_vm8, %v1905_v30, 0.0  ;;  %v331_v9 = vsel %vm2896_vm8, %v1908_v60, 0.0  ;;  %v338_v36 = vsel %vm2896_vm8, %v1911_v62, 0.0  ;;  %vm1929_vm9 = vmor %vm282_vm5, %vm283_vm7 }
  0x44   :  { %v280_v3 = vmul.f32 %v1531_v13, %v279_v44  ;;  %v306_v7 = vmul.f32 0.5, %v298_v50  ;;  %v318_v15 = vrot.slane %v317_v1, 4  ;;  %v325_v53 = vrot.slane %v324_v35, 4 }
  0x45   :  { %v332_v10 = vrot.slane %v331_v9, 4  ;;  %v339_v38 = vrot.slane %v338_v36, 4  ;;  %v345_v33 = vsel %vm2896_vm8, %v1914_v11, 0.0  ;;  %v352_v37 = vsel %vm2896_vm8, %v1917_v31, 0.0 }
  0x46   :  { %v281_v41 = vadd.f32 %v1531_v13, %v280_v3  ;;  %v1938_v5 = vmul.f32 %v1689_v27, %v306_v7  ;;  %v319_v29 = vadd.f32 %v318_v15, %v317_v1  ;;  %v326_v20 = vadd.f32 %v325_v53, %v324_v35 }
  0x47   :  { %v333_v34 = vadd.f32 %v332_v10, %v331_v9  ;;  %v340_v56 = vadd.f32 %v339_v38, %v338_v36  ;;  %v346_v42 = vrot.slane %v345_v33, 4  ;;  %v353_v48 = vrot.slane %v352_v37, 4 }
  0x48   :  { %v285_v32 = vsel %vm1929_vm9, %v1531_v13, %v281_v41  ;;  %v320_v39 = vrot.slane %v319_v29, 2  ;;  %v327_v61 = vrot.slane %v326_v20, 2  ;;  %v359_v8 = vsel %vm2896_vm8, %v1938_v5, 0.0 }
  0x49   :  { %v290_v49 = vsel %vm1893_vm6, %v289_v28, %v285_v32  ;;  %v334_v51 = vrot.slane %v333_v34, 2  ;;  %v341_v52 = vrot.slane %v340_v56, 2  ;;  %v347_v40 = vadd.f32 %v346_v42, %v345_v33 }
  0x4a   :  { %v291_v46 = vmul.f32 %v290_v49, %v1871_v54  ;;  %v321_v57 = vadd.f32 %v320_v39, %v319_v29  ;;  %v328_v58 = vadd.f32 %v327_v61, %v326_v20  ;;  %v354_v59 = vadd.f32 %v353_v48, %v352_v37 }
  0x4b   :  { %v335_v63 = vadd.f32 %v334_v51, %v333_v34  ;;  %v342_v43 = vadd.f32 %v341_v52, %v340_v56  ;;  %v348_v4 = vrot.slane %v347_v40, 2  ;;  %v360_v6 = vrot.slane %v359_v8, 4 }
  0x4c   :  { %v299_v45 = vadd.f32 1.0, %v291_v46  ;;  %v322_v13 = vrot.slane %v321_v57, 1  ;;  %v329_v14 = vrot.slane %v328_v58, 1  ;;  %v355_v16 = vrot.slane %v354_v59, 2 }
  0x4d   :  { %v336_v19 = vrot.slane %v335_v63, 1  ;;  %v343_v47 = vrot.slane %v342_v43, 1  ;;  %v349_v55 = vadd.f32 %v348_v4, %v347_v40  ;;  %v361_v21 = vadd.f32 %v360_v6, %v359_v8 }
  0x4e   :  { %v1947_v28 = vmul.f32 0.5, %v299_v45  ;;  %v323_v44 = vadd.f32 %v322_v13, %v321_v57  ;;  %v330_v50 = vadd.f32 %v329_v14, %v328_v58  ;;  %v356_v54 = vadd.f32 %v355_v16, %v354_v59 }
  0x4f   :  { %v337_v1 = vadd.f32 %v336_v19, %v335_v63  ;;  %v344_v35 = vadd.f32 %v343_v47, %v342_v43  ;;  %v350_v9 = vrot.slane %v349_v55, 1  ;;  %v362_v36 = vrot.slane %v361_v21, 2 }
  0x50   :  { %v357_v3 = vrot.slane %v356_v54, 1  ;;  %v366_v7 = vsel %vm2896_vm8, %v1947_v28, 0.0  ;;  %v373_v15 = vmax.f32 %v323_v44, 1e-06  ;;  %v1951_v53 = vmax.f32 %v330_v50, 1e-06 }
  0x51   :  { %v351_v12 = vadd.f32 %v350_v9, %v349_v55  ;;  %v363_v10 = vadd.f32 %v362_v36, %v361_v21  ;;  %v367_v38 = vrot.slane %v366_v7, 4  ;;  %v1953_v37 = vmax.f32 %v337_v1, 1e-06 }
  0x52   :  { %v358_v33 = vadd.f32 %v357_v3, %v356_v54  ;;  %1532 = vrcp.f32 %v373_v15  ;;  %v390_v20 = vand.u32 2147483647, %v373_v15  ;;  %v1955_v34 = vmax.f32 %v344_v35, 1e-06 }
  0x53   :  { %v364_v41 = vrot.slane %v363_v10, 1  ;;  %v368_v29 = vadd.f32 %v367_v38, %v366_v7  ;;  %vm386_vm0 = vweird.f32 %v373_v15  ;;  %v392_v56 = vand.u32 2147483648, %v373_v15 }
  0x54   :  { %1534 = vrcp.f32 %v1951_v53  ;;  %v1958_v32 = vmax.f32 %v351_v12, 1e-06  ;;  %v405_v39 = vand.u32 2147483647, %v1951_v53  ;;  %v1961_v61 = vmax.f32 %v358_v33, 1e-06 }
  0x55   :  { %v365_v42 = vadd.f32 %v364_v41, %v363_v10  ;;  %v369_v48 = vrot.slane %v368_v29, 2  ;;  %vm401_vm10 = vweird.f32 %v1951_v53  ;;  %v407_v8 = vand.u32 2147483648, %v1951_v53 }
  0x56   :  { %1536 = vrcp.f32 %v1953_v37  ;;  %vm1966_vm12 = vcmp.eq.f32.partialorder %v390_v20, 8.507059e+37  ;;  %v393_v52 = vor.u32 1.1754944e-38, %v392_v56  ;;  %v420_v40 = vand.u32 2147483647, %v1953_v37 }
  0x57   :  { %v370_v49 = vadd.f32 %v369_v48, %v368_v29  ;;  %v1971_v57 = vmax.f32 %v365_v42, 1e-06  ;;  %vm416_vm2 = vweird.f32 %v1953_v37  ;;  %v422_v58 = vand.u32 2147483648, %v1953_v37 }
  0x58   :  { %v1533_v46 = vpop.eup %1532  ;;  %1538 = vrcp.f32 %v1955_v34  ;;  %vm1976_vm11 = vcmp.eq.f32.partialorder %v405_v39, 8.507059e+37  ;;  %v408_v4 = vor.u32 1.1754944e-38, %v407_v8  ;;  %vm431_vm14 = vweird.f32 %v1955_v34 }
  0x59   :  { %v371_v59 = vrot.slane %v370_v49, 1  ;;  %v382_v63 = vmul.f32 %v1533_v46, %v373_v15  ;;  %vm387_vm13 = vweird.f32 %v1533_v46  ;;  %v435_v45 = vand.u32 2147483647, %v1955_v34 }
  0x5a   :  { %v1535_v6 = vpop.eup %1534  ;;  %v437_v13 = vand.u32 2147483648, %v1955_v34  ;;  %1540 = vrcp.f32 %v1958_v32  ;;  %vm1985_vm15 = vcmp.eq.f32.partialorder %v420_v40, 8.507059e+37  ;;  %v423_v21 = vor.u32 1.1754944e-38, %v422_v58  ;;  %vm2000_vm5 = vmor %vm386_vm0, %vm387_vm13 }
  0x5b   :  { %v372_v14 = vadd.f32 %v371_v59, %v370_v49  ;;  %v383_v16 = vsub.f32 1.0, %v382_v63  ;;  %v397_v19 = vmul.f32 %v1535_v6, %v1951_v53  ;;  %vm402_vm1 = vweird.f32 %v1535_v6 }
  0x5c   :  { %v1537_v55 = vpop.eup %1536  ;;  %v438_v44 = vor.u32 1.1754944e-38, %v437_v13  ;;  %v450_v50 = vand.u32 2147483647, %v1958_v32  ;;  %vm1991_vm3 = vcmp.eq.f32.partialorder %v435_v45, 8.507059e+37  ;;  %vm446_vm4 = vweird.f32 %v1958_v32  ;;  %vm2010_vm7 = vmor %vm401_vm10, %vm402_vm1 }
  0x5d   :  { %v384_v54 = vmul.f32 %v1533_v46, %v383_v16  ;;  %v398_v1 = vsub.f32 1.0, %v397_v19  ;;  %v412_v35 = vmul.f32 %v1537_v55, %v1953_v37  ;;  %v1996_v3 = vmax.f32 %v372_v14, 1e-06 }
  0x5e   :  { %v1539_v36 = vpop.eup %1538  ;;  %vm417_vm6 = vweird.f32 %v1537_v55  ;;  %v452_v12 = vand.u32 2147483648, %v1958_v32  ;;  %1542 = vrcp.f32 %v1961_v61  ;;  %vm2014_vm0 = vcmp.eq.f32.partialorder %v450_v50, 8.507059e+37 }
  0x5f   :  { %v385_v10 = vadd.f32 %v1533_v46, %v384_v54  ;;  %v399_v38 = vmul.f32 %v1535_v6, %v398_v1  ;;  %v413_v33 = vsub.f32 1.0, %v412_v35  ;;  %v427_v41 = vmul.f32 %v1539_v36, %v1955_v34  ;;  %vm2026_vm10 = vmor %vm416_vm2, %vm417_vm6 }
  0x60   :  { %v1541_v29 = vpop.eup %1540  ;;  %vm432_vm9 = vweird.f32 %v1539_v36  ;;  %v453_v56 = vor.u32 1.1754944e-38, %v452_v12  ;;  %vm461_vm13 = vweird.f32 %v1961_v61  ;;  %v465_v58 = vand.u32 2147483647, %v1961_v61 }
  0x61   :  { %v389_v42 = vsel %vm2000_vm5, %v1533_v46, %v385_v10  ;;  %v400_v48 = vadd.f32 %v1535_v6, %v399_v38  ;;  %v414_v39 = vmul.f32 %v1537_v55, %v413_v33  ;;  %v428_v8 = vsub.f32 1.0, %v427_v41 }
  0x62   :  { %v394_v53 = vsel %vm1966_vm12, %v393_v52, %v389_v42  ;;  %v442_v40 = vmul.f32 %v1541_v29, %v1958_v32  ;;  %vm447_vm1 = vweird.f32 %v1541_v29  ;;  %vm2042_vm12 = vmor %vm431_vm14, %vm432_vm9  ;;  %1544 = vrcp.f32 %v1971_v57 }
  0x63   :  { %v2033_v46 = vmul.f32 %v394_v53, %v1900_v2  ;;  %v404_v59 = vsel %vm2010_vm7, %v1535_v6, %v400_v48  ;;  %v415_v51 = vadd.f32 %v1537_v55, %v414_v39  ;;  %v429_v52 = vmul.f32 %v1539_v36, %v428_v8  ;;  %vm2073_vm14 = vmor %vm446_vm4, %vm447_vm1 }
  0x64   :  { %v1543_v63 = vpop.eup %1542  ;;  %v409_v37 = vsel %vm1976_vm11, %v408_v4, %v404_v59  ;;  %v443_v13 = vsub.f32 1.0, %v442_v40  ;;  %v467_v2 = vand.u32 2147483648, %v1961_v61  ;;  %vm2061_vm11 = vcmp.eq.f32.partialorder %v465_v58, 8.507059e+37 }
  0x65   :  { %v2049_v6 = vmul.f32 %v409_v37, %v1905_v30  ;;  %v419_v14 = vsel %vm2026_vm10, %v1537_v55, %v415_v51  ;;  %v430_v43 = vadd.f32 %v1539_v36, %v429_v52  ;;  %v457_v4 = vmul.f32 %v1543_v63, %v1961_v61  ;;  %1469 = vst.msk [vmem:[%s2887_s3] sm:$0xff] %vm2896_vm8, %v2033_v46 }
  0x66   :  { %v424_v34 = vsel %vm1985_vm15, %v423_v21, %v419_v14  ;;  %v444_v16 = vmul.f32 %v1541_v29, %v443_v13  ;;  %vm462_vm2 = vweird.f32 %v1543_v63  ;;  %v468_v21 = vor.u32 1.1754944e-38, %v467_v2 }
  0x67   :  { %v2066_v19 = vmul.f32 %v424_v34, %v1908_v60  ;;  %v434_v55 = vsel %vm2042_vm12, %v1539_v36, %v430_v43  ;;  %v458_v47 = vsub.f32 1.0, %v457_v4  ;;  %1470 = vst.msk [vmem:[%s2887_s3 + $0x8] sm:$0xff] %vm2896_vm8, %v2049_v6  ;;  %v480_v1 = vand.u32 2147483647, %v1971_v57 }
  0x68   :  { %v439_v60 = vsel %vm1991_vm3, %v438_v44, %v434_v55  ;;  %v445_v54 = vadd.f32 %v1541_v29, %v444_v16  ;;  %v482_v32 = vand.u32 2147483648, %v1971_v57  ;;  %vm476_vm15 = vweird.f32 %v1971_v57  ;;  %v1545_v44 = vpop.eup %1544  ;;  %vm2101_vm3 = vmor %vm461_vm13, %vm462_vm2 }
  0x69   :  { %v2087_v35 = vmul.f32 %v439_v60, %v1911_v62  ;;  %v459_v36 = vmul.f32 %v1543_v63, %v458_v47  ;;  %1546 = vrcp.f32 %v1996_v3  ;;  %1471 = vst.msk [vmem:[%s2887_s3 + $0x10] sm:$0xff] %vm2896_vm8, %v2066_v19  ;;  %vm2105_vm4 = vcmp.eq.f32.partialorder %v480_v1, 8.507059e+37 }
  0x6a   :  { %v449_v9 = vsel %vm2073_vm14, %v1541_v29, %v445_v54  ;;  %vm491_vm5 = vweird.f32 %v1996_v3  ;;  %v495_v12 = vand.u32 2147483647, %v1996_v3  ;;  %v472_v33 = vmul.f32 %v1545_v44, %v1971_v57 }
  0x6b   :  { %v454_v10 = vsel %vm2014_vm0, %v453_v56, %v449_v9  ;;  %v460_v38 = vadd.f32 %v1543_v63, %v459_v36  ;;  %v483_v41 = vor.u32 1.1754944e-38, %v482_v32  ;;  %1472 = vst.msk [vmem:[%s2887_s3 + $0x18] sm:$0xff] %vm2896_vm8, %v2087_v35  ;;  %vm477_vm6 = vweird.f32 %v1545_v44 }
  0x6c   :  { %v2120_v61 = vmul.f32 %v454_v10, %v1914_v11  ;;  %v497_v29 = vand.u32 2147483648, %v1996_v3  ;;  %v501_v15 = vmul.f32 %v2033_v46, %v1647_v0  ;;  %v473_v56 = vsub.f32 1.0, %v472_v33  ;;  %vm2154_vm9 = vmor %vm476_vm15, %vm477_vm6 }
  0x6d   :  { %v464_v20 = vsel %vm2101_vm3, %v1543_v63, %v460_v38  ;;  %v502_v42 = vmul.f32 %v2049_v6, %v1647_v0  ;;  %v503_v48 = vmul.f32 %v2066_v19, %v1647_v0  ;;  %vm2133_vm7 = vcmp.eq.f32.partialorder %v495_v12, 8.507059e+37 }
  0x6e   :  { %v469_v11 = vsel %vm2061_vm11, %v468_v21, %v464_v20  ;;  %v498_v8 = vor.u32 1.1754944e-38, %v497_v29  ;;  %v504_v53 = vmul.f32 %v2087_v35, %v1647_v0  ;;  %v505_v49 = vmul.f32 %v2120_v61, %v1647_v0  ;;  %1473 = vst.msk [vmem:[%s2887_s3 + $0x20] sm:$0xff] %vm2896_vm8, %v2120_v61 }
  0x6f   :  { %v1547_v40 = vpop.eup %1546  ;;  %v2147_v58 = vmul.f32 %v469_v11, %v1917_v31  ;;  %v474_v59 = vmul.f32 %v1545_v44, %v473_v56  ;;  %v509_v51 = vsel %vm2896_vm8, %v501_v15, 0.0  ;;  %v516_v52 = vsel %vm2896_vm8, %v502_v42, 0.0 }
  0x70   :  { %v487_v37 = vmul.f32 %v1547_v40, %v1996_v3  ;;  %vm492_vm0 = vweird.f32 %v1547_v40  ;;  %v510_v45 = vrot.slane %v509_v51, 4  ;;  %v517_v13 = vrot.slane %v516_v52, 4 }
  0x71   :  { %v475_v2 = vadd.f32 %v1545_v44, %v474_v59  ;;  %v506_v31 = vmul.f32 %v2147_v58, %v1647_v0  ;;  %v523_v14 = vsel %vm2896_vm8, %v503_v48, 0.0  ;;  %v530_v43 = vsel %vm2896_vm8, %v504_v53, 0.0  ;;  %1474 = vst.msk [vmem:[%s2887_s3 + $0x28] sm:$0xff] %vm2896_vm8, %v2147_v58  ;;  %vm2180_vm13 = vmor %vm491_vm5, %vm492_vm0 }
  0x72   :  { %v488_v57 = vsub.f32 1.0, %v487_v37  ;;  %v511_v4 = vadd.f32 %v510_v45, %v509_v51  ;;  %v518_v34 = vadd.f32 %v517_v13, %v516_v52  ;;  %v524_v16 = vrot.slane %v523_v14, 4  ;;  %v2204_v37 = vld [vmem:[%s2885_s1] sm:$0xff] }
  0x73   :  { %v479_v30 = vsel %vm2154_vm9, %v1545_v44, %v475_v2  ;;  %v531_v55 = vrot.slane %v530_v43, 4  ;;  %v537_v50 = vsel %vm2896_vm8, %v505_v49, 0.0  ;;  %v544_v47 = vsel %vm2896_vm8, %v506_v31, 0.0  ;;  %v2220_v31 = vld [vmem:[%s2885_s1 + $0x8] sm:$0xff] }
  0x74   :  { %v484_v21 = vsel %vm2105_vm4, %v483_v41, %v479_v30  ;;  %v489_v60 = vmul.f32 %v1547_v40, %v488_v57  ;;  %v512_v54 = vrot.slane %v511_v4, 2  ;;  %v519_v1 = vrot.slane %v518_v34, 2 }
  0x75   :  { %v2175_v32 = vmul.f32 %v484_v21, %v1938_v5  ;;  %v525_v44 = vadd.f32 %v524_v16, %v523_v14  ;;  %v532_v9 = vadd.f32 %v531_v55, %v530_v43  ;;  %v538_v62 = vrot.slane %v537_v50, 4 }
  0x76   :  { %v490_v12 = vadd.f32 %v1547_v40, %v489_v60  ;;  %v513_v10 = vadd.f32 %v512_v54, %v511_v4  ;;  %v520_v7 = vadd.f32 %v519_v1, %v518_v34  ;;  %v545_v38 = vrot.slane %v544_v47, 4 }
  0x77   :  { %2963 = vst [vmem:[#allocation5_spill] sm:$0xff] %v2175_v32  ;;  %v507_v33 = vmul.f32 %v2175_v32, %v1647_v0  ;;  %v526_v41 = vrot.slane %v525_v44, 2  ;;  %v533_v5 = vrot.slane %v532_v9, 2  ;;  %v539_v29 = vadd.f32 %v538_v62, %v537_v50 }
  0x78   :  { %1475 = vst.msk [vmem:[%s2887_s3 + $0x30] sm:$0xff] %vm2896_vm8, %v2175_v32  ;;  %v494_v3 = vsel %vm2180_vm13, %v1547_v40, %v490_v12  ;;  %v514_v15 = vrot.slane %v513_v10, 1  ;;  %v521_v20 = vrot.slane %v520_v7, 1  ;;  %v546_v56 = vadd.f32 %v545_v38, %v544_v47 }
  0x79   :  { %v499_v42 = vsel %vm2133_vm7, %v498_v8, %v494_v3  ;;  %v527_v48 = vadd.f32 %v526_v41, %v525_v44  ;;  %v534_v0 = vadd.f32 %v533_v5, %v532_v9  ;;  %v540_v11 = vrot.slane %v539_v29, 2 }
  0x7a   :  { %v2196_v53 = vmul.f32 %v499_v42, %v1947_v28  ;;  %v2198_v49 = vadd.f32 %v514_v15, %v513_v10  ;;  %v547_v59 = vrot.slane %v546_v56, 2  ;;  %v551_v40 = vsel %vm2896_vm8, %v507_v33, 0.0 }
  0x7b   :  { %v528_v51 = vrot.slane %v527_v48, 1  ;;  %v535_v52 = vrot.slane %v534_v0, 1  ;;  %v541_v63 = vadd.f32 %v540_v11, %v539_v29  ;;  %v2208_v8 = vadd.f32 %v521_v20, %v520_v7 }
  0x7c   :  { %2966 = vst [vmem:[#allocation6_spill] sm:$0xff] %v2196_v53  ;;  %v508_v39 = vmul.f32 %v2204_v37, %v2196_v53  ;;  %v548_v28 = vadd.f32 %v547_v59, %v546_v56  ;;  %v552_v45 = vrot.slane %v551_v40, 4  ;;  %v565_v14 = vmul.f32 %v2220_v31, %v2033_v46 }
  0x7d   :  { %1476 = vst.msk [vmem:[%s2887_s3 + $0x38] sm:$0xff] %vm2896_vm8, %v2196_v53  ;;  %v2215_v13 = vadd.f32 %v528_v51, %v527_v48  ;;  %v542_v2 = vrot.slane %v541_v63, 1  ;;  %v566_v43 = vmul.f32 %v2220_v31, %v2049_v6  ;;  %v567_v16 = vmul.f32 %v2220_v31, %v2066_v19 }
  0x7e   :  { %v549_v57 = vrot.slane %v548_v28, 1  ;;  %v553_v4 = vadd.f32 %v552_v45, %v551_v40  ;;  %v558_v34 = vsel %vm2896_vm8, %v508_v39, 0.0  ;;  %v2229_v30 = vadd.f32 %v535_v52, %v534_v0 }
  0x7f   :  { %v559_v55 = vrot.slane %v558_v34, 4  ;;  %v568_v50 = vmul.f32 %v2220_v31, %v2087_v35  ;;  %v569_v47 = vmul.f32 %v2220_v31, %v2120_v61  ;;  %v2235_v21 = vadd.f32 %v542_v2, %v541_v63 }
  0x80   :  { %v2237_v60 = vadd.f32 %v549_v57, %v548_v28  ;;  %v554_v54 = vrot.slane %v553_v4, 2  ;;  %v570_v1 = vmul.f32 %v2220_v31, %v2147_v58  ;;  %v571_v44 = vmul.f32 %v2220_v31, %v2175_v32 }
  0x81   :  { %v560_v36 = vadd.f32 %v559_v55, %v558_v34  ;;  %v573_v9 = vsel %vm2896_vm8, %v565_v14, 0.0  ;;  %v580_v62 = vsel %vm2896_vm8, %v566_v43, 0.0  ;;  %v587_v38 = vsel %vm2896_vm8, %v567_v16, 0.0 }
  0x82   :  { %v555_v12 = vadd.f32 %v554_v54, %v553_v4  ;;  %v574_v10 = vrot.slane %v573_v9, 4  ;;  %v581_v7 = vrot.slane %v580_v62, 4  ;;  %v588_v41 = vrot.slane %v587_v38, 4 }
  0x83   :  { %v561_v33 = vrot.slane %v560_v36, 2  ;;  %v594_v5 = vsel %vm2896_vm8, %v568_v50, 0.0  ;;  %v601_v29 = vsel %vm2896_vm8, %v569_v47, 0.0  ;;  %v608_v11 = vsel %vm2896_vm8, %v570_v1, 0.0 }
  0x84   :  { %v556_v3 = vrot.slane %v555_v12, 1  ;;  %v575_v15 = vadd.f32 %v574_v10, %v573_v9  ;;  %v582_v20 = vadd.f32 %v581_v7, %v580_v62  ;;  %v595_v56 = vrot.slane %v594_v5, 4 }
  0x85   :  { %v562_v42 = vadd.f32 %v561_v33, %v560_v36  ;;  %v589_v48 = vadd.f32 %v588_v41, %v587_v38  ;;  %v602_v0 = vrot.slane %v601_v29, 4  ;;  %v572_v59 = vmul.f32 %v2220_v31, %v2196_v53 }
  0x86   :  { %v576_v51 = vrot.slane %v575_v15, 2  ;;  %v583_v52 = vrot.slane %v582_v20, 2  ;;  %v596_v63 = vadd.f32 %v595_v56, %v594_v5  ;;  %v609_v45 = vrot.slane %v608_v11, 4 }
  0x87   :  { %v563_v40 = vrot.slane %v562_v42, 1  ;;  %v590_v39 = vrot.slane %v589_v48, 2  ;;  %v603_v28 = vadd.f32 %v602_v0, %v601_v29  ;;  %v615_v57 = vsel %vm2896_vm8, %v571_v44, 0.0 }
  0x88   :  { %v577_v2 = vadd.f32 %v576_v51, %v575_v15  ;;  %v584_v14 = vadd.f32 %v583_v52, %v582_v20  ;;  %v597_v43 = vrot.slane %v596_v63, 2  ;;  %v557_v4 = vadd.f32 %v556_v3, %v555_v12 }
  0x89   :  { %v591_v34 = vadd.f32 %v590_v39, %v589_v48  ;;  %v604_v16 = vrot.slane %v603_v28, 2  ;;  %v610_v55 = vadd.f32 %v609_v45, %v608_v11  ;;  %v616_v1 = vrot.slane %v615_v57, 4 }
  0x8a   :  { %v578_v50 = vrot.slane %v577_v2, 1  ;;  %v585_v47 = vrot.slane %v584_v14, 1  ;;  %v598_v54 = vadd.f32 %v597_v43, %v596_v63  ;;  %v622_v10 = vsel %vm2896_vm8, %v572_v59, 0.0 }
  0x8b   :  { %v592_v36 = vrot.slane %v591_v34, 1  ;;  %v605_v9 = vadd.f32 %v604_v16, %v603_v28  ;;  %v611_v62 = vrot.slane %v610_v55, 2  ;;  %v564_v7 = vadd.f32 %v563_v40, %v562_v42  ;;  %v1513_v40 = vld [vmem:[%s2884_s0] ss:$0 sm:$0xff] }
  0x8c   :  { %v579_v38 = vadd.f32 %v578_v50, %v577_v2  ;;  %v599_v33 = vrot.slane %v598_v54, 1  ;;  %v617_v41 = vadd.f32 %v616_v1, %v615_v57  ;;  %v586_v5 = vadd.f32 %v585_v47, %v584_v14 }
  0x8d   :  { %v606_v29 = vrot.slane %v605_v9, 1  ;;  %v612_v44 = vadd.f32 %v611_v62, %v610_v55  ;;  %v623_v12 = vrot.slane %v622_v10, 4  ;;  %v593_v3 = vadd.f32 %v592_v36, %v591_v34 }
  0x8e   :  { %v618_v15 = vrot.slane %v617_v41, 2  ;;  %vm2895_vm10 = vcmask 1041409   ;;  %vm2894_vm1 = vcmask 1042434   ;;  %v600_v20 = vadd.f32 %v599_v33, %v598_v54 }
  0x8f   :  { %v613_v56 = vrot.slane %v612_v44, 1  ;;  %v624_v48 = vadd.f32 %v623_v12, %v622_v10  ;;  %v641_v0 = vsel %vm2895_vm10, %v2208_v8, %v2198_v49  ;;  %vm2893_vm12 = vcmask 1043459  }
  0x90   :  { %v619_v11 = vadd.f32 %v618_v15, %v617_v41  ;;  %v643_v42 = vsel %vm2894_vm1, %v2215_v13, %v641_v0  ;;  %vm2892_vm2 = vcmask 1044484   ;;  %v607_v59 = vadd.f32 %v606_v29, %v605_v9 }
  0x91   :  { %v625_v51 = vrot.slane %v624_v48, 2  ;;  %v645_v52 = vsel %vm2893_vm12, %v2229_v30, %v643_v42  ;;  %vm2891_vm11 = vcmask 1045509   ;;  %vm2890_vm14 = vcmask 1046534  }
  0x92   :  { %v620_v63 = vrot.slane %v619_v11, 1  ;;  %v647_v49 = vsel %vm2892_vm2, %v2235_v21, %v645_v52  ;;  %vm2889_vm15 = vcmask 1047559   ;;  %v614_v8 = vadd.f32 %v613_v56, %v612_v44 }
  0x93   :  { %v626_v13 = vadd.f32 %v625_v51, %v624_v48  ;;  %v649_v39 = vsel %vm2891_vm11, %v2237_v60, %v647_v49  ;;  %v675_v28 = vsel %vm2895_vm10, %v586_v5, %v579_v38 }
  0x94   :  { %v621_v45 = vadd.f32 %v620_v63, %v619_v11  ;;  %v651_v30 = vsel %vm2890_vm14, %v557_v4, %v649_v39  ;;  %v676_v2 = vsel %vm2894_vm1, %v593_v3, %v675_v28 }
  0x95   :  { %v627_v14 = vrot.slane %v626_v13, 1  ;;  %v653_v43 = vsel %vm2889_vm15, %v564_v7, %v651_v30  ;;  %v677_v57 = vsel %vm2893_vm12, %v600_v20, %v676_v2 }
  0x96   :  { %v655_v21 = vmul.f32 %v1513_v40, %v653_v43  ;;  %v678_v34 = vsel %vm2892_vm2, %v607_v59, %v677_v57 }
  0x97   :  { %v628_v16 = vadd.f32 %v627_v14, %v626_v13  ;;  %v679_v55 = vsel %vm2891_vm11, %v614_v8, %v678_v34 }
  0x98   :  { %vm656_vm3 = vcmp.ne.f32.partialorder %v655_v21, %v655_v21  ;;  %v657_v60 = vand.u32 2147483647, %v655_v21  ;;  %v680_v50 = vsel %vm2890_vm14, %v621_v45, %v679_v55 }
  0x99   :  { %v681_v47 = vsel %vm2889_vm15, %v628_v16, %v680_v50 }
  0x9a   :  { %vm658_vm4 = vcmp.eq.f32.partialorder %v657_v60, inf  ;;  %v683_v4 = vmul.f32 %v1513_v40, %v681_v47 }
  0x9b   :  { %vm659_vm5 = vmor %vm656_vm3, %vm658_vm4 }
  0x9c   :  { %v2276_v54 = vsel %vm659_vm5, 0.0, %v655_v21  ;;  %vm684_vm6 = vcmp.ne.f32.partialorder %v683_v4, %v683_v4  ;;  %v685_v1 = vand.u32 2147483647, %v683_v4 }
  0x9d   :  { %v661_v36 = vadd.f32 %v2204_v37, %v2276_v54 }
  0x9e   :  { %vm686_vm7 = vcmp.eq.f32.partialorder %v685_v1, inf }
  0x9f   :  { %vm687_vm9 = vmor %vm684_vm6, %vm686_vm7  ;;  %v663_v10 = vand.u32 2147483647, %v661_v36  ;;  %vm662_vm0 = vcmp.ne.f32.partialorder %v661_v36, %v661_v36 }
  0xa0   :  { %v2280_v9 = vsel %vm687_vm9, 0.0, %v683_v4 }
  0xa1   :  { %2967 = vst [vmem:[#allocation7_spill] sm:$0xff] %v2280_v9  ;;  %v689_v62 = vadd.f32 %v2220_v31, %v2280_v9  ;;  %vm664_vm13 = vcmp.eq.f32.partialorder %v663_v10, inf }
  0xa2   :  { %vm665_vm4 = vmor %vm662_vm0, %vm664_vm13 }
  0xa3   :  { %v691_v7 = vand.u32 2147483647, %v689_v62  ;;  %vm690_vm15 = vcmp.ne.f32.partialorder %v689_v62, %v689_v62  ;;  %v2285_v38 = vsel %vm665_vm4, %v2204_v37, %v661_v36 }
  0xa4   :  { %v727_v41 = vmul.f32 %v2285_v38, %v2285_v38  ;;  %v696_v44 = vrot.slane %v2285_v38, 1  ;;  %v697_v12 = vrot.slane %v2285_v38, 2  ;;  %v698_v37 = vrot.slane %v2285_v38, 3 }
  0xa5   :  { %vm692_vm3 = vcmp.eq.f32.partialorder %v691_v7, inf  ;;  %v699_v3 = vrot.slane %v2285_v38, 4  ;;  %v700_v15 = vrot.slane %v2285_v38, 5  ;;  %v701_v20 = vrot.slane %v2285_v38, 6 }
  0xa6   :  { %vm693_vm5 = vmor %vm690_vm15, %vm692_vm3  ;;  %v702_v48 = vrot.slane %v2285_v38, 7  ;;  %v703_v0 = vperm.slane %v2285_v38, 0  ;;  %v704_v11 = vperm.slane %v696_v44, 0  ;;  %v705_v59 = vperm.slane %v697_v12, 0 }
  0xa7   :  { %v2288_v33 = vsel %vm693_vm5, %v2220_v31, %v689_v62  ;;  %v706_v51 = vperm.slane %v698_v37, 0  ;;  %v707_v52 = vperm.slane %v699_v3, 0  ;;  %v708_v40 = vperm.slane %v700_v15, 0 }
  0xa8   :  { %v768_v5 = vmul.f32 %v2288_v33, %v2288_v33  ;;  %v729_v42 = vrot.slane %v2288_v33, 1  ;;  %v730_v49 = vrot.slane %v2288_v33, 2  ;;  %v731_v8 = vrot.slane %v2288_v33, 3 }
  0xa9   :  { %v732_v13 = vrot.slane %v2288_v33, 4  ;;  %v733_v39 = vrot.slane %v2288_v33, 5  ;;  %v734_v28 = vrot.slane %v2288_v33, 6  ;;  %v735_v45 = vrot.slane %v2288_v33, 7 }
  0xaa   :  { %v2294_v29 = vadd.f32 %v768_v5, %v727_v41  ;;  %v709_v2 = vperm.slane %v701_v20, 0  ;;  %v710_v14 = vperm.slane %v702_v48, 0  ;;  %v736_v43 = vperm.slane %v2288_v33, 0 }
  0xab   :  { %v737_v57 = vperm.slane %v729_v42, 0  ;;  %v719_v21 = vmul.f32 %v703_v0, %v2285_v38  ;;  %v720_v34 = vmul.f32 %v704_v11, %v2285_v38  ;;  %v721_v16 = vmul.f32 %v705_v59, %v2285_v38 }
  0xac   :  { %1548 = vrsqrt.f32 %v2294_v29  ;;  %v722_v60 = vmul.f32 %v706_v51, %v2285_v38  ;;  %v738_v50 = vperm.slane %v730_v49, 0  ;;  %v739_v47 = vperm.slane %v731_v8, 0 }
  0xad   :  { %v740_v4 = vperm.slane %v732_v13, 0  ;;  %v741_v1 = vperm.slane %v733_v39, 0  ;;  %v742_v36 = vperm.slane %v734_v28, 0  ;;  %v743_v62 = vperm.slane %v735_v45, 0 }
  0xae   :  { %v752_v7 = vmul.f32 %v736_v43, %v2288_v33  ;;  %v753_v41 = vmul.f32 %v737_v57, %v2288_v33  ;;  %vm777_vm15 = vcmp.eq.f32.partialorder %v2294_v29, inf  ;;  %v780_v5 = vand.u32 2147483648, %v2294_v29 }
  0xaf   :  { %v723_v44 = vmul.f32 %v707_v52, %v2285_v38  ;;  %v724_v12 = vmul.f32 %v708_v40, %v2285_v38  ;;  %vm779_vm6 = vcmp.eq.f32.partialorder %v2294_v29, 0.0  ;;  %v725_v3 = vmul.f32 %v709_v2, %v2285_v38 }
  0xb0   :  { %v754_v15 = vmul.f32 %v738_v50, %v2288_v33  ;;  %v755_v20 = vmul.f32 %v739_v47, %v2288_v33  ;;  %v757_v48 = vmul.f32 %v741_v1, %v2288_v33  ;;  %v758_v0 = vmul.f32 %v742_v36, %v2288_v33 }
  0xb1   :  { %v759_v42 = vmul.f32 %v743_v62, %v2288_v33  ;;  %v2335_v59 = vadd.f32 %v752_v7, %v719_v21  ;;  %v2337_v51 = vadd.f32 %v753_v41, %v720_v34 }
  0xb2   :  { %v1549_v31 = vpop.eup %1548  ;;  %v2339_v50 = vadd.f32 %v754_v15, %v721_v16  ;;  %v2341_v1 = vadd.f32 %v755_v20, %v722_v60  ;;  %v2351_v16 = vadd.f32 %v758_v0, %v725_v3 }
  0xb3   :  { %v771_v56 = vmul.f32 %v1549_v31, %v2294_v29 }
  0xb5   :  { %v772_v63 = vmul.f32 %v1549_v31, %v771_v56  ;;  %v756_v56 = vmul.f32 %v740_v4, %v2288_v33 }
  0xb7   :  { %v773_v30 = vmul.f32 0.5, %v772_v63 }
  0xb9   :  { %v774_v55 = vsub.f32 1.5, %v773_v30 }
  0xbb   :  { %v775_v10 = vmul.f32 %v1549_v31, %v774_v55  ;;  %v726_v31 = vmul.f32 %v710_v14, %v2285_v38 }
  0xbd   :  { %v776_v37 = vmul.f32 %v775_v10, %v2294_v29  ;;  %v2353_v15 = vadd.f32 %v759_v42, %v726_v31 }
  0xbf   :  { %v778_v11 = vsel %vm777_vm15, %v2294_v29, %v776_v37 }
  0xc0   :  { %v781_v52 = vsel %vm779_vm6, %v780_v5, %v778_v11  ;;  %v2347_v11 = vadd.f32 %v756_v56, %v723_v44 }
  0xc1   :  { %v783_v63 = vrot.slane %v781_v52, 1  ;;  %v784_v40 = vrot.slane %v781_v52, 2  ;;  %v785_v49 = vrot.slane %v781_v52, 3  ;;  %v786_v8 = vrot.slane %v781_v52, 4 }
  0xc2   :  { %v787_v13 = vrot.slane %v781_v52, 5  ;;  %v788_v39 = vrot.slane %v781_v52, 6  ;;  %v789_v28 = vrot.slane %v781_v52, 7  ;;  %v790_v45 = vperm.slane %v781_v52, 0 }
  0xc3   :  { %v791_v30 = vperm.slane %v783_v63, 0  ;;  %v792_v2 = vperm.slane %v784_v40, 0  ;;  %v793_v14 = vperm.slane %v785_v49, 0  ;;  %v794_v43 = vperm.slane %v786_v8, 0 }
  0xc4   :  { %v795_v29 = vperm.slane %v787_v13, 0  ;;  %v796_v57 = vperm.slane %v788_v39, 0  ;;  %v797_v55 = vperm.slane %v789_v28, 0  ;;  %v806_v21 = vmul.f32 %v790_v45, %v781_v52 }
  0xc5   :  { %v807_v34 = vmul.f32 %v791_v30, %v781_v52  ;;  %v808_v47 = vmul.f32 %v792_v2, %v781_v52  ;;  %v809_v4 = vmul.f32 %v793_v14, %v781_v52  ;;  %v810_v36 = vmul.f32 %v794_v43, %v781_v52 }
  0xc6   :  { %v811_v62 = vmul.f32 %v795_v29, %v781_v52  ;;  %v814_v10 = vmax.f32 %v806_v21, 1e-06  ;;  %v812_v7 = vmul.f32 %v796_v57, %v781_v52  ;;  %v813_v41 = vmul.f32 %v797_v55, %v781_v52 }
  0xc7   :  { %v2343_v5 = vmax.f32 %v807_v34, 1e-06  ;;  %v2345_v37 = vmax.f32 %v808_v47, 1e-06  ;;  %v2349_v63 = vadd.f32 %v757_v48, %v724_v12  ;;  %v2355_v60 = vmax.f32 %v809_v4, 1e-06 }
  0xc8   :  { %1550 = vrcp.f32 %v814_v10  ;;  %v831_v20 = vand.u32 2147483647, %v814_v10  ;;  %v833_v40 = vand.u32 2147483648, %v814_v10  ;;  %v2357_v49 = vmax.f32 %v810_v36, 1e-06 }
  0xc9   :  { %v2359_v52 = vmax.f32 %v811_v62, 1e-06  ;;  %1552 = vrcp.f32 %v2343_v5  ;;  %v848_v44 = vand.u32 2147483648, %v2343_v5  ;;  %v2363_v56 = vmax.f32 %v812_v7, 1e-06 }
  0xca   :  { %v2365_v12 = vmax.f32 %v813_v41, 1e-06  ;;  %v846_v3 = vand.u32 2147483647, %v2343_v5  ;;  %1554 = vrcp.f32 %v2345_v37  ;;  %vm827_vm7 = vweird.f32 %v814_v10 }
  0xcb   :  { %vm842_vm9 = vweird.f32 %v2343_v5  ;;  %v861_v31 = vand.u32 2147483647, %v2345_v37  ;;  %v863_v48 = vand.u32 2147483648, %v2345_v37  ;;  %vm2372_vm0 = vcmp.eq.f32.partialorder %v831_v20, 8.507059e+37 }
  0xcc   :  { %v834_v42 = vor.u32 1.1754944e-38, %v833_v40  ;;  %1556 = vrcp.f32 %v2355_v60  ;;  %v878_v8 = vand.u32 2147483648, %v2355_v60  ;;  %v2378_v39 = vor.u32 1.1754944e-38, %v848_v44 }
  0xcd   :  { %vm857_vm13 = vweird.f32 %v2345_v37  ;;  %v876_v28 = vand.u32 2147483647, %v2355_v60  ;;  %1558 = vrcp.f32 %v2357_v49  ;;  %vm2383_vm3 = vcmp.eq.f32.partialorder %v846_v3, 8.507059e+37 }
  0xce   :  { %v1551_v13 = vpop.eup %1550  ;;  %v864_v2 = vor.u32 1.1754944e-38, %v863_v48  ;;  %vm872_vm4 = vweird.f32 %v2355_v60  ;;  %vm2389_vm6 = vcmp.eq.f32.partialorder %v861_v31, 8.507059e+37  ;;  %v891_v29 = vand.u32 2147483647, %v2357_v49 }
  0xcf   :  { %v823_v45 = vmul.f32 %v1551_v13, %v814_v10  ;;  %v1553_v14 = vpop.eup %1552  ;;  %vm828_vm15 = vweird.f32 %v1551_v13  ;;  %v893_v57 = vand.u32 2147483648, %v2357_v49  ;;  %1560 = vrcp.f32 %v2359_v52 }
  0xd0   :  { %v1555_v55 = vpop.eup %1554  ;;  %v838_v34 = vmul.f32 %v1553_v14, %v2343_v5  ;;  %v879_v47 = vor.u32 1.1754944e-38, %v878_v8  ;;  %v906_v4 = vand.u32 2147483647, %v2359_v52  ;;  %vm843_vm14 = vweird.f32 %v1553_v14  ;;  %vm2411_vm10 = vmor %vm827_vm7, %vm828_vm15 }
  0xd1   :  { %v824_v21 = vsub.f32 1.0, %v823_v45  ;;  %v853_v36 = vmul.f32 %v1555_v55, %v2345_v37  ;;  %vm858_vm11 = vweird.f32 %v1555_v55  ;;  %vm2399_vm2 = vcmp.eq.f32.partialorder %v876_v28, 8.507059e+37  ;;  %vm2425_vm7 = vmor %vm842_vm9, %vm843_vm14 }
  0xd2   :  { %v1557_v7 = vpop.eup %1556  ;;  %v839_v20 = vsub.f32 1.0, %v838_v34  ;;  %vm2404_vm1 = vcmp.eq.f32.partialorder %v891_v29, 8.507059e+37  ;;  %v908_v44 = vand.u32 2147483648, %v2359_v52  ;;  %v894_v28 = vor.u32 1.1754944e-38, %v893_v57  ;;  %vm2434_vm5 = vmor %vm857_vm13, %vm858_vm11 }
  0xd3   :  { %v825_v41 = vmul.f32 %v1551_v13, %v824_v21  ;;  %v1559_v3 = vpop.eup %1558  ;;  %v854_v48 = vsub.f32 1.0, %v853_v36  ;;  %v868_v8 = vmul.f32 %v1557_v7, %v2355_v60  ;;  %1562 = vrcp.f32 %v2363_v56 }
  0xd4   :  { %v840_v29 = vmul.f32 %v1553_v14, %v839_v20  ;;  %vm873_vm8 = vweird.f32 %v1557_v7  ;;  %v883_v21 = vmul.f32 %v1559_v3, %v2357_v49  ;;  %vm2418_vm12 = vcmp.eq.f32.partialorder %v906_v4, 8.507059e+37 }
  0xd5   :  { %v826_v45 = vadd.f32 %v1551_v13, %v825_v41  ;;  %v1561_v10 = vpop.eup %1560  ;;  %v855_v57 = vmul.f32 %v1555_v55, %v854_v48  ;;  %v869_v17 = vsub.f32 1.0, %v868_v8  ;;  %vm888_vm15 = vweird.f32 %v1559_v3 }
  0xd6   :  { %v909_v41 = vor.u32 1.1754944e-38, %v908_v44  ;;  %v841_v53 = vadd.f32 %v1553_v14, %v840_v29  ;;  %v884_v5 = vsub.f32 1.0, %v883_v21  ;;  %v898_v32 = vmul.f32 %v1561_v10, %v2359_v52 }
  0xd7   :  { %v830_v20 = vsel %vm2411_vm10, %v1551_v13, %v826_v45  ;;  %v856_v8 = vadd.f32 %v1555_v55, %v855_v57  ;;  %v870_v9 = vmul.f32 %v1557_v7, %v869_v17  ;;  %vm917_vm14 = vweird.f32 %v2363_v56  ;;  %vm2447_vm10 = vmor %vm872_vm4, %vm873_vm8 }
  0xd8   :  { %v835_v48 = vsel %vm2372_vm0, %v834_v42, %v830_v20  ;;  %v845_v13 = vsel %vm2425_vm7, %v1553_v14, %v841_v53  ;;  %v885_v44 = vmul.f32 %v1559_v3, %v884_v5  ;;  %v899_v31 = vsub.f32 1.0, %v898_v32 }
  0xd9   :  { %vm903_vm11 = vweird.f32 %v1561_v10  ;;  %v1563_v45 = vpop.eup %1562  ;;  %v836_v0 = vmul.f32 %v835_v48, %v2335_v59  ;;  %v850_v17 = vsel %vm2383_vm3, %v2378_v39, %v845_v13  ;;  %v860_v53 = vsel %vm2434_vm5, %v1555_v55, %v856_v8 }
  0xda   :  { %v871_v42 = vadd.f32 %v1557_v7, %v870_v9  ;;  %vm2988_vm8 = vweird.f32 %v2357_v49  ;;  %v865_v32 = vsel %vm2389_vm6, %v864_v2, %v860_v53  ;;  %v886_v14 = vadd.f32 %v1559_v3, %v885_v44 }
  0xdb   :  { %vm2460_vm9 = vmor %vm2988_vm8, %vm888_vm15  ;;  %v900_v59 = vmul.f32 %v1561_v10, %v899_v31  ;;  %v921_v29 = vand.u32 2147483647, %v2363_v56  ;;  %v851_v39 = vmul.f32 %v850_v17, %v2337_v51  ;;  %v866_v30 = vmul.f32 %v865_v32, %v2339_v50 }
  0xdc   :  { %v875_v9 = vsel %vm2447_vm10, %v1557_v7, %v871_v42  ;;  %vm2991_vm0 = vweird.f32 %v2359_v52  ;;  %v913_v49 = vmul.f32 %v1563_v45, %v2363_v56  ;;  %v890_v2 = vsel %vm2460_vm9, %v1559_v3, %v886_v14 }
  0xdd   :  { %vm904_vm13 = vmor %vm2991_vm0, %vm903_vm11  ;;  %v880_v43 = vsel %vm2399_vm2, %v879_v47, %v875_v9  ;;  %v901_v55 = vadd.f32 %v1561_v10, %v900_v59  ;;  %vm918_vm3 = vweird.f32 %v1563_v45  ;;  %v895_v50 = vsel %vm2404_vm1, %v894_v28, %v890_v2 }
  0xde   :  { %v881_v51 = vmul.f32 %v880_v43, %v2341_v1  ;;  %v914_v21 = vsub.f32 1.0, %v913_v49  ;;  %v923_v7 = vand.u32 2147483648, %v2363_v56  ;;  %v896_v52 = vmul.f32 %v895_v50, %v2347_v11  ;;  %vm2494_vm1 = vmor %vm917_vm14, %vm918_vm3 }
  0xdf   :  { %v905_v36 = vsel %vm904_vm13, %v1561_v10, %v901_v55  ;;  %vm2483_vm4 = vcmp.eq.f32.partialorder %v921_v29, 8.507059e+37  ;;  %1564 = vrcp.f32 %v2365_v12  ;;  %v936_v40 = vand.u32 2147483647, %v2365_v12 }
  0xe0   :  { %v910_v47 = vsel %vm2418_vm12, %v909_v41, %v905_v36  ;;  %v915_v62 = vmul.f32 %v1563_v45, %v914_v21  ;;  %v924_v1 = vor.u32 1.1754944e-38, %v923_v7  ;;  %v938_v28 = vand.u32 2147483648, %v2365_v12 }
  0xe1   :  { %v911_v3 = vmul.f32 %v910_v47, %v2349_v63  ;;  %v942_v10 = vadd.f32 1.0, %v836_v0  ;;  %v943_v20 = vadd.f32 1.0, %v851_v39  ;;  %vm932_vm2 = vweird.f32 %v2365_v12 }
  0xe2   :  { %v916_v4 = vadd.f32 %v1563_v45, %v915_v62  ;;  %v944_v34 = vadd.f32 1.0, %v866_v30  ;;  %v945_v41 = vadd.f32 1.0, %v881_v51  ;;  %v939_v5 = vor.u32 1.1754944e-38, %v938_v28 }
  0xe3   :  { %v946_v48 = vadd.f32 1.0, %v896_v52  ;;  %v947_v8 = vadd.f32 1.0, %v911_v3  ;;  %v950_v13 = vmul.f32 0.5, %v942_v10  ;;  %vm2502_vm12 = vcmp.eq.f32.partialorder %v936_v40, 8.507059e+37 }
  0xe4   :  { %v920_v63 = vsel %vm2494_vm1, %v1563_v45, %v916_v4  ;;  %v951_v37 = vmul.f32 0.5, %v943_v20  ;;  %v952_v44 = vmul.f32 0.5, %v944_v34  ;;  %v953_v31 = vmul.f32 0.5, %v945_v41 }
  0xe5   :  { %v1565_v0 = vpop.eup %1564  ;;  %v925_v17 = vsel %vm2483_vm4, %v924_v1, %v920_v63  ;;  %v954_v53 = vmul.f32 0.5, %v946_v48  ;;  %v955_v42 = vmul.f32 0.5, %v947_v8  ;;  %v2509_v60 = vmul.f32 %v1670_v18, %v950_v13 }
  0xe6   :  { %v926_v32 = vmul.f32 %v925_v17, %v2351_v16  ;;  %v928_v45 = vmul.f32 %v1565_v0, %v2365_v12  ;;  %vm933_vm5 = vweird.f32 %v1565_v0  ;;  %v2514_v14 = vmul.f32 %v1674_v22, %v951_v37 }
  0xe7   :  { %v2517_v59 = vmul.f32 %v1677_v23, %v952_v44  ;;  %v2520_v29 = vmul.f32 %v1680_v24, %v953_v31  ;;  %v2523_v39 = vmul.f32 %v1683_v25, %v954_v53  ;;  %v2526_v18 = vmul.f32 %v1686_v26, %v955_v42  ;;  %vm2539_vm10 = vmor %vm932_vm2, %vm933_vm5 }
  0xe8   :  { %v929_v30 = vsub.f32 1.0, %v928_v45  ;;  %v948_v16 = vadd.f32 1.0, %v926_v32  ;;  %vm2998_vm6 = vcmask 15360  }
  0xe9   :  { %v966_v9 = vsel %vm2998_vm6, %v2509_v60, 0.0  ;;  %vm2999_vm7 = vmmov %vm2998_vm6 }
  0xea   :  { %v973_v22 = vsel %vm2999_vm7, %v2514_v14, 0.0  ;;  %v967_v49 = vrot.slane %v966_v9, 4  ;;  %vm3000_vm15 = vmmov %vm2998_vm6  ;;  %v930_v43 = vmul.f32 %v1565_v0, %v929_v30  ;;  %v956_v2 = vmul.f32 0.5, %v948_v16 }
  0xeb   :  { %v974_v23 = vrot.slane %v973_v22, 4  ;;  %v980_v24 = vsel %vm3000_vm15, %v2517_v59, 0.0  ;;  %vm3001_vm14 = vmmov %vm2998_vm6 }
  0xec   :  { %v987_v25 = vsel %vm3001_vm14, %v2520_v29, 0.0  ;;  %v981_v26 = vrot.slane %v980_v24, 4  ;;  %v968_v50 = vadd.f32 %v967_v49, %v966_v9  ;;  %vm3004_vm11 = vmmov %vm2998_vm6  ;;  %v931_v36 = vadd.f32 %v1565_v0, %v930_v43 }
  0xed   :  { %v988_v55 = vrot.slane %v987_v25, 4  ;;  %v975_v21 = vadd.f32 %v974_v23, %v973_v22  ;;  %v994_v7 = vsel %vm3004_vm11, %v2523_v39, 0.0  ;;  %vm3005_vm8 = vmmov %vm2998_vm6  ;;  %v2548_v57 = vmul.f32 %v1689_v27, %v956_v2 }
  0xee   :  { %v1001_v52 = vsel %vm3005_vm8, %v2526_v18, 0.0  ;;  %v982_v47 = vadd.f32 %v981_v26, %v980_v24  ;;  %v969_v1 = vrot.slane %v968_v50, 2  ;;  %v995_v40 = vrot.slane %v994_v7, 4  ;;  %vm3006_vm9 = vmmov %vm2998_vm6 }
  0xef   :  { %v989_v62 = vadd.f32 %v988_v55, %v987_v25  ;;  %v976_v12 = vrot.slane %v975_v21, 2  ;;  %v1002_v3 = vrot.slane %v1001_v52, 4  ;;  %v935_v11 = vsel %vm2539_vm10, %v1565_v0, %v931_v36  ;;  %vm3007_vm0 = vmmov %vm2998_vm6 }
  0xf0   :  { %v983_v28 = vrot.slane %v982_v47, 2  ;;  %v1008_v20 = vsel %vm3006_vm9, %v2548_v57, 0.0  ;;  %v940_v4 = vsel %vm2502_vm12, %v939_v5, %v935_v11  ;;  %v970_v34 = vadd.f32 %v969_v1, %v968_v50 }
  0xf1   :  { %v990_v10 = vrot.slane %v989_v62, 2  ;;  %v977_v27 = vadd.f32 %v976_v12, %v975_v21  ;;  %v996_v41 = vadd.f32 %v995_v40, %v994_v7  ;;  %v941_v48 = vmul.f32 %v940_v4, %v2353_v15 }
  0xf2   :  { %v984_v8 = vadd.f32 %v983_v28, %v982_v47  ;;  %v1003_v63 = vadd.f32 %v1002_v3, %v1001_v52  ;;  %v971_v37 = vrot.slane %v970_v34, 1  ;;  %v1009_v0 = vrot.slane %v1008_v20, 4 }
  0xf3   :  { %v991_v13 = vadd.f32 %v990_v10, %v989_v62  ;;  %v978_v44 = vrot.slane %v977_v27, 1  ;;  %v997_v31 = vrot.slane %v996_v41, 2  ;;  %v949_v17 = vadd.f32 1.0, %v941_v48 }
  0xf4   :  { %v985_v53 = vrot.slane %v984_v8, 1  ;;  %v1004_v32 = vrot.slane %v1003_v63, 2  ;;  %v972_v45 = vadd.f32 %v971_v37, %v970_v34  ;;  %v1010_v5 = vadd.f32 %v1009_v0, %v1008_v20 }
  0xf5   :  { %v992_v42 = vrot.slane %v991_v13, 1  ;;  %v979_v30 = vadd.f32 %v978_v44, %v977_v27  ;;  %v998_v56 = vadd.f32 %v997_v31, %v996_v41  ;;  %v2557_v16 = vmul.f32 0.5, %v949_v17 }
  0xf6   :  { %v986_v9 = vadd.f32 %v985_v53, %v984_v8  ;;  %v1005_v22 = vadd.f32 %v1004_v32, %v1003_v63  ;;  %v1011_v49 = vrot.slane %v1010_v5, 2  ;;  %v1022_v23 = vmax.f32 %v972_v45, 1e-06 }
  0xf7   :  { %v999_v15 = vrot.slane %v998_v56, 1  ;;  %v2559_v24 = vmax.f32 %v979_v30, 1e-06  ;;  %v993_v25 = vadd.f32 %v992_v42, %v991_v13  ;;  %v1015_v2 = vsel %vm3007_vm0, %v2557_v16, 0.0 }
  0xf8   :  { %v1006_v43 = vrot.slane %v1005_v22, 1  ;;  %v1012_v55 = vadd.f32 %v1011_v49, %v1010_v5  ;;  %v1016_v51 = vrot.slane %v1015_v2, 4  ;;  %1566 = vrcp.f32 %v1022_v23 }
  0xf9   :  { %v1000_v26 = vadd.f32 %v999_v15, %v998_v56  ;;  %v2563_v21 = vmax.f32 %v986_v9, 1e-06  ;;  %v1039_v7 = vand.u32 2147483647, %v1022_v23  ;;  %v1041_v52 = vand.u32 2147483648, %v1022_v23 }
  0xfa   :  { %v1007_v50 = vadd.f32 %v1006_v43, %v1005_v22  ;;  %v1013_v36 = vrot.slane %v1012_v55, 1  ;;  %v1017_v47 = vadd.f32 %v1016_v51, %v1015_v2  ;;  %1568 = vrcp.f32 %v2559_v24 }
  0xfb   :  { %v2566_v62 = vmax.f32 %v993_v25, 1e-06  ;;  %v2568_v1 = vmax.f32 %v1000_v26, 1e-06  ;;  %vm1035_vm13 = vweird.f32 %v1022_v23  ;;  %v1054_v3 = vand.u32 2147483647, %v2559_v24 }
  0xfc   :  { %v1014_v12 = vadd.f32 %v1013_v36, %v1012_v55  ;;  %v1018_v40 = vrot.slane %v1017_v47, 2  ;;  %v1056_v11 = vand.u32 2147483648, %v2559_v24  ;;  %v2572_v28 = vmax.f32 %v1007_v50, 1e-06 }
  0xfd   :  { %vm2574_vm3 = vcmp.eq.f32.partialorder %v1039_v7, 8.507059e+37  ;;  %v1042_v20 = vor.u32 1.1754944e-38, %v1041_v52  ;;  %1570 = vrcp.f32 %v2563_v21  ;;  %vm1050_vm4 = vweird.f32 %v2559_v24 }
  0xfe   :  { %v1567_v4 = vpop.eup %1566  ;;  %v1019_v34 = vadd.f32 %v1018_v40, %v1017_v47  ;;  %v1069_v27 = vand.u32 2147483647, %v2563_v21  ;;  %v1071_v41 = vand.u32 2147483648, %v2563_v21  ;;  %v2582_v48 = vmax.f32 %v1014_v12, 1e-06 }
  0xff   :  { %v1031_v8 = vmul.f32 %v1567_v4, %v1022_v23  ;;  %vm2584_vm1 = vcmp.eq.f32.partialorder %v1054_v3, 8.507059e+37  ;;  %vm1065_vm2 = vweird.f32 %v2563_v21  ;;  %vm1036_vm12 = vweird.f32 %v1567_v4 }
 0x100   :  { %v1569_v63 = vpop.eup %1568  ;;  %v1020_v37 = vrot.slane %v1019_v34, 1  ;;  %v1057_v44 = vor.u32 1.1754944e-38, %v1056_v11  ;;  %1572 = vrcp.f32 %v2566_v62  ;;  %v1084_v17 = vand.u32 2147483647, %v2566_v62  ;;  %vm2601_vm7 = vmor %vm1035_vm13, %vm1036_vm12 }
 0x101   :  { %v1032_v31 = vsub.f32 1.0, %v1031_v8  ;;  %v1046_v0 = vmul.f32 %v1569_v63, %v2559_v24  ;;  %v1086_v53 = vand.u32 2147483648, %v2566_v62  ;;  %vm2593_vm5 = vcmp.eq.f32.partialorder %v1069_v27, 8.507059e+37 }
 0x102   :  { %v1021_v42 = vadd.f32 %v1020_v37, %v1019_v34  ;;  %v1072_v45 = vor.u32 1.1754944e-38, %v1071_v41  ;;  %1574 = vrcp.f32 %v2568_v1  ;;  %vm1051_vm6 = vweird.f32 %v1569_v63 }
 0x103   :  { %v1571_v30 = vpop.eup %1570  ;;  %v1033_v56 = vmul.f32 %v1567_v4, %v1032_v31  ;;  %v1047_v5 = vsub.f32 1.0, %v1046_v0  ;;  %v1099_v9 = vand.u32 2147483647, %v2568_v1  ;;  %vm1080_vm15 = vweird.f32 %v2566_v62  ;;  %vm2618_vm11 = vmor %vm1050_vm4, %vm1051_vm6 }
 0x104   :  { %v1061_v15 = vmul.f32 %v1571_v30, %v2563_v21  ;;  %vm1095_vm14 = vweird.f32 %v2568_v1  ;;  %v1101_v49 = vand.u32 2147483648, %v2568_v1  ;;  %vm2609_vm10 = vcmp.eq.f32.partialorder %v1084_v17, 8.507059e+37 }
 0x105   :  { %v1034_v25 = vadd.f32 %v1567_v4, %v1033_v56  ;;  %v1048_v43 = vmul.f32 %v1569_v63, %v1047_v5  ;;  %v1087_v26 = vor.u32 1.1754944e-38, %v1086_v53  ;;  %1576 = vrcp.f32 %v2572_v28 }
 0x106   :  { %v1573_v23 = vpop.eup %1572  ;;  %v2614_v55 = vmax.f32 %v1021_v42, 1e-06  ;;  %v1062_v50 = vsub.f32 1.0, %v1061_v15  ;;  %vm1066_vm8 = vweird.f32 %v1571_v30  ;;  %v1114_v7 = vand.u32 2147483647, %v2572_v28 }
 0x107   :  { %v1038_v52 = vsel %vm2601_vm7, %v1567_v4, %v1034_v25  ;;  %v1049_v36 = vadd.f32 %v1569_v63, %v1048_v43  ;;  %v1076_v47 = vmul.f32 %v1573_v23, %v2566_v62  ;;  %vm2626_vm9 = vcmp.eq.f32.partialorder %v1099_v9, 8.507059e+37  ;;  %vm2638_vm13 = vmor %vm1065_vm2, %vm1066_vm8 }
 0x108   :  { %v1102_v40 = vor.u32 1.1754944e-38, %v1101_v49  ;;  %v1575_v24 = vpop.eup %1574  ;;  %v1043_v3 = vsel %vm2574_vm3, %v1042_v20, %v1038_v52  ;;  %v1063_v11 = vmul.f32 %v1571_v30, %v1062_v50  ;;  %vm1110_vm0 = vweird.f32 %v2572_v28 }
 0x109   :  { %v1116_v34 = vand.u32 2147483648, %v2572_v28  ;;  %v1053_v4 = vsel %vm2618_vm11, %v1569_v63, %v1049_v36  ;;  %v1077_v41 = vsub.f32 1.0, %v1076_v47  ;;  %vm1081_vm4 = vweird.f32 %v1573_v23 }
 0x10a   :  { %v1091_v8 = vmul.f32 %v1575_v24, %v2568_v1  ;;  %v2644_v10 = vmul.f32 %v1043_v3, %v2509_v60  ;;  %v1058_v20 = vsel %vm2584_vm1, %v1057_v44, %v1053_v4  ;;  %v1064_v37 = vadd.f32 %v1571_v30, %v1063_v11  ;;  %vm2660_vm1 = vmor %vm1080_vm15, %vm1081_vm4 }
 0x10b   :  { %vm1096_vm3 = vweird.f32 %v1575_v24  ;;  %vm2648_vm12 = vcmp.eq.f32.partialorder %v1114_v7, 8.507059e+37  ;;  %v1577_v21 = vpop.eup %1576  ;;  %v1078_v31 = vmul.f32 %v1573_v23, %v1077_v41  ;;  %v1117_v17 = vor.u32 1.1754944e-38, %v1116_v34 }
 0x10c   :  { %v1092_v0 = vsub.f32 1.0, %v1091_v8  ;;  %1578 = vrcp.f32 %v2582_v48  ;;  %v2654_v53 = vmul.f32 %v1058_v20, %v2514_v14  ;;  %v1068_v60 = vsel %vm2638_vm13, %v1571_v30, %v1064_v37  ;;  %vm2671_vm6 = vmor %vm1095_vm14, %vm1096_vm3 }
 0x10d   :  { %v1106_v44 = vmul.f32 %v1577_v21, %v2572_v28  ;;  %vm1111_vm2 = vweird.f32 %v1577_v21  ;;  %v1073_v42 = vsel %vm2593_vm5, %v1072_v45, %v1068_v60  ;;  %v1079_v56 = vadd.f32 %v1573_v23, %v1078_v31 }
 0x10e   :  { %v1093_v5 = vmul.f32 %v1575_v24, %v1092_v0  ;;  %v1129_v14 = vand.u32 2147483647, %v2582_v48  ;;  %vm1125_vm7 = vweird.f32 %v2582_v48  ;;  %v1131_v9 = vand.u32 2147483648, %v2582_v48  ;;  %vm2699_vm14 = vmor %vm1110_vm0, %vm1111_vm2 }
 0x10f   :  { %v1107_v62 = vsub.f32 1.0, %v1106_v44  ;;  %1580 = vrcp.f32 %v2614_v55  ;;  %v2679_v32 = vmul.f32 %v1073_v42, %v2517_v59  ;;  %v1083_v45 = vsel %vm2660_vm1, %v1573_v23, %v1079_v56 }
 0x110   :  { %v1094_v22 = vadd.f32 %v1575_v24, %v1093_v5  ;;  %vm1140_vm5 = vweird.f32 %v2614_v55  ;;  %v1088_v1 = vsel %vm2609_vm10, %v1087_v26, %v1083_v45  ;;  %vm2686_vm15 = vcmp.eq.f32.partialorder %v1129_v14, 8.507059e+37 }
 0x111   :  { %v1108_v15 = vmul.f32 %v1577_v21, %v1107_v62  ;;  %v1132_v25 = vor.u32 1.1754944e-38, %v1131_v9  ;;  %v1144_v43 = vand.u32 2147483647, %v2614_v55  ;;  %v2692_v59 = vmul.f32 %v1088_v1, %v2520_v29 }
 0x112   :  { %v1579_v51 = vpop.eup %1578  ;;  %v1098_v23 = vsel %vm2671_vm6, %v1575_v24, %v1094_v22  ;;  %v1146_v26 = vand.u32 2147483648, %v2614_v55  ;;  %v1150_v50 = vmul.f32 %v2644_v10, %v2285_v38  ;;  %v1151_v24 = vmul.f32 %v2654_v53, %v2285_v38 }
 0x113   :  { %v1103_v7 = vsel %vm2626_vm9, %v1102_v40, %v1098_v23  ;;  %v1109_v29 = vadd.f32 %v1577_v21, %v1108_v15  ;;  %v1121_v52 = vmul.f32 %v1579_v51, %v2582_v48  ;;  %vm1126_vm10 = vweird.f32 %v1579_v51 }
 0x114   :  { %v2710_v36 = vmul.f32 %v1103_v7, %v2523_v39  ;;  %vm2712_vm11 = vcmp.eq.f32.partialorder %v1144_v43, 8.507059e+37  ;;  %v1147_v47 = vor.u32 1.1754944e-38, %v1146_v26  ;;  %v1152_v11 = vmul.f32 %v2679_v32, %v2285_v38  ;;  %vm2737_vm13 = vmor %vm1125_vm7, %vm1126_vm10 }
 0x115   :  { %v1581_v3 = vpop.eup %1580  ;;  %v1113_v12 = vsel %vm2699_vm14, %v1577_v21, %v1109_v29  ;;  %v1122_v40 = vsub.f32 1.0, %v1121_v52  ;;  %v1153_v39 = vmul.f32 %v2692_v59, %v2285_v38  ;;  %vm3036_vm9 = vcmask 15360  }
 0x116   :  { %v1118_v34 = vsel %vm2648_vm12, %v1117_v17, %v1113_v12  ;;  %v1136_v4 = vmul.f32 %v1581_v3, %v2614_v55  ;;  %vm1141_vm8 = vweird.f32 %v1581_v3  ;;  %v1154_v27 = vmul.f32 %v2710_v36, %v2285_v38  ;;  %vm3037_vm0 = vmmov %vm3036_vm9 }
 0x117   :  { %v2730_v41 = vmul.f32 %v1118_v34, %v2526_v18  ;;  %v1123_v8 = vmul.f32 %v1579_v51, %v1122_v40  ;;  %v1158_v20 = vsel %vm3036_vm9, %v1150_v50, 0.0  ;;  %v1165_v37 = vsel %vm3037_vm0, %v1151_v24, 0.0  ;;  %vm3040_vm4 = vmmov %vm3037_vm0 }
 0x118   :  { %v1137_v21 = vsub.f32 1.0, %v1136_v4  ;;  %v1159_v31 = vrot.slane %v1158_v20, 4  ;;  %v1166_v0 = vrot.slane %v1165_v37, 4  ;;  %v1172_v17 = vsel %vm3040_vm4, %v1152_v11, 0.0  ;;  %vm3041_vm3 = vmmov %vm3037_vm0 }
 0x119   :  { %v1124_v60 = vadd.f32 %v1579_v51, %v1123_v8  ;;  %v1155_v18 = vmul.f32 %v2730_v41, %v2285_v38  ;;  %v1173_v13 = vrot.slane %v1172_v17, 4  ;;  %v1179_v44 = vsel %vm3041_vm3, %v1153_v39, 0.0  ;;  %vm2750_vm12 = vmor %vm1140_vm5, %vm1141_vm8 }
 0x11a   :  { %v1138_v42 = vmul.f32 %v1581_v3, %v1137_v21  ;;  %v1160_v56 = vadd.f32 %v1159_v31, %v1158_v20  ;;  %v1167_v5 = vadd.f32 %v1166_v0, %v1165_v37  ;;  %v1180_v48 = vrot.slane %v1179_v44, 4  ;;  %vm3044_vm1 = vmmov %vm3037_vm0 }
 0x11b   :  { %v1128_v14 = vsel %vm2737_vm13, %v1579_v51, %v1124_v60  ;;  %v1174_v62 = vadd.f32 %v1173_v13, %v1172_v17  ;;  %v1186_v9 = vsel %vm3044_vm1, %v1154_v27, 0.0  ;;  %vm3045_vm2 = vmmov %vm3037_vm0  ;;  %v1214_v0 = vmul.f32 %v2644_v10, %v2288_v33 }
 0x11c   :  { %v1193_v45 = vsel %vm3045_vm2, %v1155_v18, 0.0  ;;  %v1133_v22 = vsel %vm2686_vm15, %v1132_v25, %v1128_v14  ;;  %v1139_v1 = vadd.f32 %v1581_v3, %v1138_v42  ;;  %v1161_v15 = vrot.slane %v1160_v56, 2  ;;  %vm3046_vm6 = vmmov %vm3037_vm0 }
 0x11d   :  { %v1168_v43 = vrot.slane %v1167_v5, 2  ;;  %v1134_v51 = vmul.f32 %v1133_v22, %v2548_v57  ;;  %v1175_v23 = vrot.slane %v1174_v62, 2  ;;  %v1181_v2 = vadd.f32 %v1180_v48, %v1179_v44  ;;  %vm3047_vm7 = vmmov %vm3037_vm0 }
 0x11e   :  { %v1187_v55 = vrot.slane %v1186_v9, 4  ;;  %v1143_v26 = vsel %vm2750_vm12, %v1581_v3, %v1139_v1  ;;  %v1162_v50 = vadd.f32 %v1161_v15, %v1160_v56  ;;  %v1194_v29 = vrot.slane %v1193_v45, 4  ;;  %vm3048_vm5 = vmmov %vm3037_vm0 }
 0x11f   :  { %v1169_v7 = vadd.f32 %v1168_v43, %v1167_v5  ;;  %v1148_v52 = vsel %vm2712_vm11, %v1147_v47, %v1143_v26  ;;  %v1156_v49 = vmul.f32 %v1134_v51, %v2285_v38  ;;  %v1176_v25 = vadd.f32 %v1175_v23, %v1174_v62  ;;  %vm3049_vm15 = vmmov %vm3037_vm0 }
 0x120   :  { %v1182_v24 = vrot.slane %v1181_v2, 2  ;;  %v1149_v12 = vmul.f32 %v1148_v52, %v2557_v16  ;;  %v1163_v40 = vrot.slane %v1162_v50, 1  ;;  %v1188_v11 = vadd.f32 %v1187_v55, %v1186_v9  ;;  %vm3050_vm14 = vmmov %vm3037_vm0 }
 0x121   :  { %v1170_v57 = vrot.slane %v1169_v7, 1  ;;  %v1177_v39 = vrot.slane %v1176_v25, 1  ;;  %v1195_v4 = vadd.f32 %v1194_v29, %v1193_v45  ;;  %v1200_v3 = vsel %vm3046_vm6, %v1156_v49, 0.0  ;;  %vm3051_vm10 = vmmov %vm3037_vm0 }
 0x122   :  { %v1183_v34 = vadd.f32 %v1182_v24, %v1181_v2  ;;  %v1157_v27 = vmul.f32 %v1149_v12, %v2285_v38  ;;  %v2767_v8 = vadd.f32 %v1163_v40, %v1162_v50  ;;  %v1189_v28 = vrot.slane %v1188_v11, 2  ;;  %vm3052_vm11 = vmmov %vm3037_vm0 }
 0x123   :  { %v2769_v47 = vadd.f32 %v1170_v57, %v1169_v7  ;;  %v1196_v37 = vrot.slane %v1195_v4, 2  ;;  %v1201_v63 = vrot.slane %v1200_v3, 4  ;;  %v2771_v21 = vadd.f32 %v1177_v39, %v1176_v25  ;;  %vm3053_vm8 = vmmov %vm3037_vm0 }
 0x124   :  { %v1184_v20 = vrot.slane %v1183_v34, 1  ;;  %v1190_v16 = vadd.f32 %v1189_v28, %v1188_v11  ;;  %v1207_v31 = vsel %vm3047_vm7, %v1157_v27, 0.0  ;;  %v1215_v38 = vmul.f32 %v2654_v53, %v2288_v33  ;;  %vm3054_vm9 = vmmov %vm3037_vm0 }
 0x125   :  { %v1197_v17 = vadd.f32 %v1196_v37, %v1195_v4  ;;  %v1202_v60 = vadd.f32 %v1201_v63, %v1200_v3  ;;  %v1208_v18 = vrot.slane %v1207_v31, 4  ;;  %v1216_v44 = vmul.f32 %v2679_v32, %v2288_v33 }
 0x126   :  { %v1191_v13 = vrot.slane %v1190_v16, 1  ;;  %v1217_v42 = vmul.f32 %v2692_v59, %v2288_v33  ;;  %v1218_v56 = vmul.f32 %v2710_v36, %v2288_v33  ;;  %v2784_v5 = vadd.f32 %v1184_v20, %v1183_v34 }
 0x127   :  { %v1198_v48 = vrot.slane %v1197_v17, 1  ;;  %v1203_v10 = vrot.slane %v1202_v60, 2  ;;  %v1209_v14 = vadd.f32 %v1208_v18, %v1207_v31  ;;  %v1219_v53 = vmul.f32 %v2730_v41, %v2288_v33 }
 0x128   :  { %v2786_v30 = vadd.f32 %v1191_v13, %v1190_v16  ;;  %v1220_v62 = vmul.f32 %v1134_v51, %v2288_v33  ;;  %v1222_v32 = vsel %vm3048_vm5, %v1214_v0, 0.0  ;;  %v1221_v59 = vmul.f32 %v1149_v12, %v2288_v33 }
 0x129   :  { %v1204_v9 = vadd.f32 %v1203_v10, %v1202_v60  ;;  %v1210_v45 = vrot.slane %v1209_v14, 2  ;;  %v1223_v22 = vrot.slane %v1222_v32, 4  ;;  %v1229_v36 = vsel %vm3049_vm15, %v1215_v38, 0.0 }
 0x12a   :  { %v1236_v1 = vsel %vm3050_vm14, %v1216_v44, 0.0  ;;  %v1243_v15 = vsel %vm3051_vm10, %v1217_v42, 0.0  ;;  %v1250_v43 = vsel %vm3052_vm11, %v1218_v56, 0.0  ;;  %v1230_v55 = vrot.slane %v1229_v36, 4 }
 0x12b   :  { %v1205_v23 = vrot.slane %v1204_v9, 1  ;;  %v1211_v2 = vadd.f32 %v1210_v45, %v1209_v14  ;;  %v1224_v41 = vadd.f32 %v1223_v22, %v1222_v32  ;;  %v1237_v51 = vrot.slane %v1236_v1, 4 }
 0x12c   :  { %v1244_v26 = vrot.slane %v1243_v15, 4  ;;  %v1251_v50 = vrot.slane %v1250_v43, 4  ;;  %v1257_v7 = vsel %vm3053_vm8, %v1219_v53, 0.0  ;;  %v1199_v29 = vadd.f32 %v1198_v48, %v1197_v17  ;;  %vm3068_vm8 = vmmov %vm3037_vm0 }
 0x12d   :  { %v1206_v33 = vadd.f32 %v1205_v23, %v1204_v9  ;;  %v1225_v52 = vrot.slane %v1224_v41, 2  ;;  %v1231_v49 = vadd.f32 %v1230_v55, %v1229_v36  ;;  %v1238_v25 = vadd.f32 %v1237_v51, %v1236_v1 }
 0x12e   :  { %v1245_v24 = vadd.f32 %v1244_v26, %v1243_v15  ;;  %v1252_v12 = vadd.f32 %v1251_v50, %v1250_v43  ;;  %v1258_v40 = vrot.slane %v1257_v7, 4  ;;  %v1212_v57 = vrot.slane %v1211_v2, 1 }
 0x12f   :  { %v1226_v11 = vadd.f32 %v1225_v52, %v1224_v41  ;;  %v1232_v39 = vrot.slane %v1231_v49, 2  ;;  %v1264_v34 = vsel %vm3054_vm9, %v1220_v62, 0.0  ;;  %v1239_v4 = vrot.slane %v1238_v25, 2  ;;  %vm3069_vm9 = vmmov %vm3037_vm0 }
 0x130   :  { %v1246_v3 = vrot.slane %v1245_v24, 2  ;;  %v1253_v27 = vrot.slane %v1252_v12, 2  ;;  %v1259_v28 = vadd.f32 %v1258_v40, %v1257_v7  ;;  %v1265_v63 = vrot.slane %v1264_v34, 4 }
 0x131   :  { %v1227_v20 = vrot.slane %v1226_v11, 1  ;;  %v1233_v37 = vadd.f32 %v1232_v39, %v1231_v49  ;;  %v1271_v16 = vsel %vm3037_vm0, %v1221_v59, 0.0  ;;  %v1240_v31 = vadd.f32 %v1239_v4, %v1238_v25 }
 0x132   :  { %v1247_v0 = vadd.f32 %v1246_v3, %v1245_v24  ;;  %v1254_v17 = vadd.f32 %v1253_v27, %v1252_v12  ;;  %v1260_v60 = vrot.slane %v1259_v28, 2  ;;  %v1266_v13 = vadd.f32 %v1265_v63, %v1264_v34  ;;  %v1588_v12 = vld [vmem:[%s2884_s0] ss:$0 sm:$0xff] }
 0x133   :  { %v1228_v18 = vadd.f32 %v1227_v20, %v1226_v11  ;;  %v1234_v38 = vrot.slane %v1233_v37, 1  ;;  %v1272_v44 = vrot.slane %v1271_v16, 4  ;;  %v1241_v42 = vrot.slane %v1240_v31, 1 }
 0x134   :  { %v1248_v56 = vrot.slane %v1247_v0, 1  ;;  %v1255_v48 = vrot.slane %v1254_v17, 1  ;;  %v1261_v10 = vadd.f32 %v1260_v60, %v1259_v28  ;;  %v1267_v53 = vrot.slane %v1266_v13, 2 }
 0x135   :  { %v1235_v14 = vadd.f32 %v1234_v38, %v1233_v37  ;;  %v1273_v62 = vadd.f32 %v1272_v44, %v1271_v16  ;;  %vm3055_vm13 = vcmask 1041409   ;;  %v1242_v9 = vadd.f32 %v1241_v42, %v1240_v31  ;;  %v3074_v44 = vld [vmem:[#allocation7_spill] sm:$0xff] }
 0x136   :  { %v1286_v32 = vsel %vm3055_vm13, %v2769_v47, %v2767_v8  ;;  %v1249_v45 = vadd.f32 %v1248_v56, %v1247_v0  ;;  %v1256_v59 = vadd.f32 %v1255_v48, %v1254_v17  ;;  %v1262_v22 = vrot.slane %v1261_v10, 1  ;;  %vm3057_vm3 = vmmov %vm3055_vm13 }
 0x137   :  { %v1268_v36 = vadd.f32 %v1267_v53, %v1266_v13  ;;  %v1274_v1 = vrot.slane %v1273_v62, 2  ;;  %vm3056_vm4 = vcmask 1042434   ;;  %v1311_v43 = vsel %vm3057_vm3, %v1235_v14, %v1228_v18  ;;  %vm3071_vm3 = vmmov %vm3037_vm0 }
 0x138   :  { %v1287_v15 = vsel %vm3056_vm4, %v2771_v21, %v1286_v32  ;;  %v1213_v23 = vadd.f32 %v1212_v57, %v1211_v2  ;;  %v1263_v41 = vadd.f32 %v1262_v22, %v1261_v10  ;;  %vm3058_vm12 = vcmask 1043459   ;;  %vm3059_vm1 = vmmov %vm3056_vm4  ;;  %v3075_v32 = vld [vmem:[#allocation5_spill] sm:$0xff] }
 0x139   :  { %v1288_v55 = vsel %vm3058_vm12, %v2784_v5, %v1287_v15  ;;  %v1312_v51 = vsel %vm3059_vm1, %v1242_v9, %v1311_v43  ;;  %v1269_v26 = vrot.slane %v1268_v36, 1  ;;  %v1275_v8 = vadd.f32 %v1274_v1, %v1273_v62  ;;  %vm3061_vm6 = vmmov %vm3058_vm12 }
 0x13a   :  { %vm3060_vm2 = vcmask 1044484   ;;  %v1313_v50 = vsel %vm3061_vm6, %v1249_v45, %v1312_v51  ;;  %vm3062_vm7 = vcmask 1045509   ;;  %vm3064_vm15 = vcmask 1046534   ;;  %vm3072_vm6 = vmmov %vm3037_vm0  ;;  %v2849_v45 = vld [vmem:[%s2885_s1 + $0x8] sm:$0xff] }
 0x13b   :  { %v1289_v47 = vsel %vm3060_vm2, %v2786_v30, %v1288_v55  ;;  %vm3063_vm5 = vmmov %vm3060_vm2  ;;  %v1270_v52 = vadd.f32 %v1269_v26, %v1268_v36  ;;  %v1276_v49 = vrot.slane %v1275_v8, 1  ;;  %vm3066_vm10 = vcmask 1047559  }
 0x13c   :  { %v1290_v7 = vsel %vm3062_vm7, %v1199_v29, %v1289_v47  ;;  %v1314_v21 = vsel %vm3063_vm5, %v1256_v59, %v1313_v50  ;;  %vm3065_vm14 = vmmov %vm3062_vm7  ;;  %v1344_v29 = vsel %vm3068_vm8, %v2033_v46, 0.0  ;;  %v1351_v11 = vsel %vm3069_vm9, %v2049_v6, 0.0 }
 0x13d   :  { %v1291_v2 = vsel %vm3064_vm15, %v1206_v33, %v1290_v7  ;;  %v1315_v25 = vsel %vm3065_vm14, %v1263_v41, %v1314_v21  ;;  %v1277_v24 = vadd.f32 %v1276_v49, %v1275_v8  ;;  %vm3067_vm11 = vmmov %vm3064_vm15  ;;  %v1345_v57 = vrot.slane %v1344_v29, 4  ;;  %v3077_v41 = vld [vmem:[#allocation6_spill] sm:$0xff] }
 0x13e   :  { %v1292_v5 = vsel %vm3066_vm10, %v1213_v23, %v1291_v2  ;;  %v1316_v40 = vsel %vm3067_vm11, %v1270_v52, %v1315_v25  ;;  %v1358_v33 = vsel %vm3037_vm0, %v2066_v19, 0.0  ;;  %vm3070_vm4 = vmmov %vm3066_vm10  ;;  %v1352_v4 = vrot.slane %v1351_v11, 4 }
 0x13f   :  { %v1294_v30 = vmul.f32 %v1588_v12, %v1292_v5  ;;  %v1317_v34 = vsel %vm3070_vm4, %v1277_v24, %v1316_v40  ;;  %v1346_v27 = vadd.f32 %v1345_v57, %v1344_v29  ;;  %v1359_v28 = vrot.slane %v1358_v33, 4  ;;  %vm3073_vm15 = vmmov %vm3037_vm0 }
 0x140   :  { %v1319_v3 = vmul.f32 %v1588_v12, %v1317_v34  ;;  %v1365_v20 = vsel %vm3071_vm3, %v2087_v35, 0.0  ;;  %v1353_v46 = vadd.f32 %v1352_v4, %v1351_v11  ;;  %v1372_v19 = vsel %vm3072_vm6, %v2120_v61, 0.0  ;;  %v2839_v61 = vld [vmem:[%s2885_s1] sm:$0xff]  ;;  %vm3076_vm14 = vmmov %vm3037_vm0 }
 0x141   :  { %vm1295_vm13 = vcmp.ne.f32.partialorder %v1294_v30, %v1294_v30  ;;  %v1296_v39 = vand.u32 2147483647, %v1294_v30  ;;  %v1366_v6 = vrot.slane %v1365_v20, 4  ;;  %v1360_v16 = vadd.f32 %v1359_v28, %v1358_v33  ;;  %vm3078_vm10 = vmmov %vm3037_vm0 }
 0x142   :  { %vm1320_vm2 = vcmp.ne.f32.partialorder %v1319_v3, %v1319_v3  ;;  %v1321_v37 = vand.u32 2147483647, %v1319_v3  ;;  %v1347_v0 = vrot.slane %v1346_v27, 2  ;;  %v1354_v17 = vrot.slane %v1353_v46, 2 }
 0x143   :  { %vm1297_vm12 = vcmp.eq.f32.partialorder %v1296_v39, inf  ;;  %v1373_v60 = vrot.slane %v1372_v19, 4  ;;  %v1379_v35 = vsel %vm3073_vm15, %v2147_v58, 0.0  ;;  %v1367_v13 = vadd.f32 %v1366_v6, %v1365_v20 }
 0x144   :  { %vm1298_vm1 = vmor %vm1295_vm13, %vm1297_vm12  ;;  %vm1322_vm7 = vcmp.eq.f32.partialorder %v1321_v37, inf  ;;  %v1361_v56 = vrot.slane %v1360_v16, 2  ;;  %v1348_v48 = vadd.f32 %v1347_v0, %v1346_v27  ;;  %v1355_v10 = vadd.f32 %v1354_v17, %v1353_v46 }
 0x145   :  { %v1299_v63 = vsel %vm1298_vm1, 0.0, %v1294_v30  ;;  %vm1323_vm5 = vmor %vm1320_vm2, %vm1322_vm7  ;;  %v1380_v14 = vrot.slane %v1379_v35, 4  ;;  %v1374_v62 = vadd.f32 %v1373_v60, %v1372_v19  ;;  %v1368_v58 = vrot.slane %v1367_v13, 2 }
 0x146   :  { %v1300_v31 = vadd.f32 %v1299_v63, %v2276_v54  ;;  %v1324_v38 = vsel %vm1323_vm5, 0.0, %v1319_v3  ;;  %v1386_v9 = vsel %vm3076_vm14, %v3075_v32, 0.0  ;;  %v1362_v36 = vadd.f32 %v1361_v56, %v1360_v16 }
 0x147   :  { %v1325_v42 = vadd.f32 %v1324_v38, %v3074_v44  ;;  %v1387_v1 = vrot.slane %v1386_v9, 4  ;;  %v1349_v15 = vrot.slane %v1348_v48, 1  ;;  %v1356_v43 = vrot.slane %v1355_v10, 1 }
 0x148   :  { %v1301_v18 = vmul.f32 0.5, %v1300_v31  ;;  %v1381_v23 = vadd.f32 %v1380_v14, %v1379_v35  ;;  %v1393_v55 = vsel %vm3078_vm10, %v3077_v41, 0.0  ;;  %v1375_v26 = vrot.slane %v1374_v62, 2 }
 0x149   :  { %v1326_v53 = vmul.f32 0.5, %v1325_v42  ;;  %v1369_v8 = vadd.f32 %v1368_v58, %v1367_v13  ;;  %v1394_v47 = vrot.slane %v1393_v55, 4  ;;  %v1363_v7 = vrot.slane %v1362_v36, 1 }
 0x14a   :  { %v2842_v54 = vadd.f32 %v2839_v61, %v1301_v18  ;;  %v1388_v21 = vadd.f32 %v1387_v1, %v1386_v9  ;;  %v1350_v52 = vadd.f32 %v1349_v15, %v1348_v48  ;;  %v1357_v49 = vadd.f32 %v1356_v43, %v1355_v10 }
 0x14b   :  { %v2852_v59 = vadd.f32 %v2849_v45, %v1326_v53  ;;  %v1382_v2 = vrot.slane %v1381_v23, 2  ;;  %v1376_v25 = vadd.f32 %v1375_v26, %v1374_v62  ;;  %v1370_v5 = vrot.slane %v1369_v8, 1 }
 0x14c   :  { %v1328_v22 = vmul.f32 %v2842_v54, %v2842_v54  ;;  %v1395_v24 = vadd.f32 %v1394_v47, %v1393_v55  ;;  %v1364_v12 = vadd.f32 %v1363_v7, %v1362_v36  ;;  %v1389_v30 = vrot.slane %v1388_v21, 2 }
 0x14d   :  { %v1329_v51 = vmul.f32 %v2852_v59, %v2852_v59  ;;  %v1383_v40 = vadd.f32 %v1382_v2, %v1381_v23  ;;  %v1400_v29 = vmul.f32 0.01, %v1350_v52  ;;  %v1401_v57 = vmul.f32 0.01, %v1357_v49 }
 0x14e   :  { %v1377_v11 = vrot.slane %v1376_v25, 1  ;;  %v1371_v33 = vadd.f32 %v1370_v5, %v1369_v8  ;;  %v1396_v39 = vrot.slane %v1395_v24, 2  ;;  %v1390_v4 = vadd.f32 %v1389_v30, %v1388_v21 }
 0x14f   :  { %v1330_v50 = vadd.f32 %v1329_v51, %v1328_v22  ;;  %v1402_v3 = vmul.f32 0.01, %v1364_v12  ;;  %v1384_v28 = vrot.slane %v1383_v40, 1  ;;  %vm3079_vm11 = vcmask 1041409  }
 0x150   :  { %v1416_v20 = vsel %vm3079_vm11, %v1401_v57, %v1400_v29  ;;  %v1378_v46 = vadd.f32 %v1377_v11, %v1376_v25  ;;  %v1397_v6 = vadd.f32 %v1396_v39, %v1395_v24  ;;  %v1403_v19 = vmul.f32 0.01, %v1371_v33 }
 0x151   :  { %1582 = vrsqrt.f32 %v1330_v50  ;;  %v1391_v63 = vrot.slane %v1390_v4, 1  ;;  %vm3080_vm8 = vcmask 1042434   ;;  %v1385_v0 = vadd.f32 %v1384_v28, %v1383_v40 }
 0x152   :  { %v1417_v16 = vsel %vm3080_vm8, %v1402_v3, %v1416_v20  ;;  %v1404_v17 = vmul.f32 0.01, %v1378_v46  ;;  %v1398_v35 = vrot.slane %v1397_v6, 1  ;;  %vm3081_vm9 = vcmask 1043459  }
 0x153   :  { %v1418_v18 = vsel %vm3081_vm9, %v1403_v19, %v1417_v16  ;;  %v1392_v38 = vadd.f32 %v1391_v63, %v1390_v4  ;;  %v1405_v44 = vmul.f32 0.01, %v1385_v0  ;;  %vm1338_vm0 = vcmp.eq.f32.partialorder %v1330_v50, inf }
 0x154   :  { %v1341_v42 = vand.u32 2147483648, %v1330_v50  ;;  %vm3082_vm13 = vcmask 1044484   ;;  %vm1340_vm4 = vcmp.eq.f32.partialorder %v1330_v50, 0.0  ;;  %v1399_v10 = vadd.f32 %v1398_v35, %v1397_v6 }
 0x155   :  { %v1419_v56 = vsel %vm3082_vm13, %v1404_v17, %v1418_v18  ;;  %v1406_v14 = vmul.f32 0.01, %v1392_v38  ;;  %vm3083_vm3 = vcmask 1045509   ;;  %vm3084_vm12 = vcmask 1046534  }
 0x156   :  { %v1420_v62 = vsel %vm3083_vm3, %v1405_v44, %v1419_v56  ;;  %v1407_v9 = vmul.f32 0.01, %v1399_v10  ;;  %vm3085_vm1 = vcmask 1047559   ;;  %vm3086_vm13 = vcmask 15360  }
 0x157   :  { %v1583_v34 = vpop.eup %1582  ;;  %v1421_v22 = vsel %vm3084_vm12, %v1406_v14, %v1420_v62  ;;  %v3087_v12 = vmov 0.0   ;;  %vm1462_vm12 = vcmask 8192  }
 0x158   :  { %v1332_v27 = vmul.f32 %v1583_v34, %v1330_v50  ;;  %v1422_v36 = vsel %vm3085_vm1, %v1407_v9, %v1421_v22 }
 0x15a   :  { %v1333_v37 = vmul.f32 %v1583_v34, %v1332_v27 }
 0x15c   :  { %v1334_v31 = vmul.f32 0.5, %v1333_v37 }
 0x15e   :  { %v1335_v60 = vsub.f32 1.5, %v1334_v31 }
 0x160   :  { %v1336_v13 = vmul.f32 %v1583_v34, %v1335_v60 }
 0x162   :  { %v1337_v48 = vmul.f32 %v1336_v13, %v1330_v50 }
 0x164   :  { %v1339_v53 = vsel %vm1338_vm0, %v1330_v50, %v1337_v48 }
 0x165   :  { %v1342_v58 = vsel %vm1340_vm4, %v1341_v42, %v1339_v53  ;;  %vm3088_vm4 = vmmov %vm3086_vm13 }
 0x166   :  { %v1343_v32 = vmax.f32 %v1342_v58, 1e-06  ;;  %vm3089_vm3 = vmmov %vm3088_vm4 }
 0x168   :  { %1584 = vrcp.f32 %v1343_v32  ;;  %v1424_v1 = vadd.f32 %v1422_v36, %v1343_v32  ;;  %vm1432_vm2 = vweird.f32 %v1343_v32  ;;  %v1438_v23 = vand.u32 2147483648, %v1343_v32 }
 0x169   :  { %v1436_v51 = vand.u32 2147483647, %v1343_v32 }
 0x16a   :  { %v1425_v41 = vmax.f32 %v1424_v1, 0.1  ;;  %v1439_v8 = vor.u32 1.1754944e-38, %v1438_v23 }
 0x16b   :  { %vm1437_vm5 = vcmp.eq.f32.partialorder %v1436_v51, 8.507059e+37 }
 0x16c   :  { %v1426_v47 = vmin.f32 %v1425_v41, 2.0 }
 0x16e   :  { %v1585_v15 = vpop.eup %1584 }
 0x16f   :  { %v1428_v43 = vmul.f32 %v1585_v15, %v1343_v32  ;;  %vm1433_vm6 = vweird.f32 %v1585_v15 }
 0x170   :  { %vm1434_vm7 = vmor %vm1432_vm2, %vm1433_vm6 }
 0x171   :  { %v1429_v55 = vsub.f32 1.0, %v1428_v43 }
 0x173   :  { %v1430_v26 = vmul.f32 %v1585_v15, %v1429_v55 }
 0x175   :  { %v1431_v50 = vadd.f32 %v1585_v15, %v1430_v26 }
 0x177   :  { %v1435_v7 = vsel %vm1434_vm7, %v1585_v15, %v1431_v50 }
 0x178   :  { %v1440_v21 = vsel %vm1437_vm5, %v1439_v8, %v1435_v7 }
 0x179   :  { %v1441_v52 = vmul.f32 %v1440_v21, %v1426_v47 }
 0x17b   :  { %v1442_v49 = vmul.f32 %v1441_v52, %v2842_v54  ;;  %v1443_v2 = vmul.f32 %v1441_v52, %v2852_v59 }
 0x17d   :  { %vm1444_vm15 = vcmp.ne.f32.partialorder %v1442_v49, %v1442_v49  ;;  %v1445_v25 = vand.u32 2147483647, %v1442_v49  ;;  %v1449_v5 = vand.u32 2147483647, %v1443_v2  ;;  %vm1448_vm14 = vcmp.ne.f32.partialorder %v1443_v2, %v1443_v2 }
 0x17f   :  { %vm1446_vm10 = vcmp.eq.f32.partialorder %v1445_v25, inf  ;;  %vm1450_vm11 = vcmp.eq.f32.partialorder %v1449_v5, inf }
 0x180   :  { %vm1447_vm8 = vmor %vm1444_vm15, %vm1446_vm10 }
 0x181   :  { %vm1451_vm9 = vmor %vm1448_vm14, %vm1450_vm11  ;;  %v1464_v24 = vsel %vm1447_vm8, %v2839_v61, %v1442_v49 }
 0x182   :  { %vm1452_vm0 = vmor %vm1447_vm8, %vm1451_vm9  ;;  %1465 = vst.msk [vmem:[%s2886_s2] sm:$0xff] %vm3086_vm13, %v1464_v24  ;;  %v1466_v54 = vsel %vm1451_vm9, %v2849_v45, %v1443_v2 }
 0x183   :  { %v1509_v59 = vsel %vm1452_vm0, 1.0, %v3087_v12  ;;  %1510 = vst.msk [vmem:[%s2886_s2 + $0x8] sm:$0xff] %vm3088_vm4, %v1466_v54 }
 0x184   :  { %v1455_v30 = vsel %vm3089_vm3, %v1509_v59, -inf }
 0x185   :  { %v1456_v40 = vrot.slane %v1455_v30, 4 }
 0x187   :  { %v1457_v29 = vmax.f32 %v1455_v30, %v1456_v40 }
 0x189   :  { %v1458_v61 = vrot.slane %v1457_v29, 2 }
 0x18b   :  { %v1459_v57 = vmax.f32 %v1457_v29, %v1458_v61 }
 0x18d   :  { %v1460_v45 = vrot.slane %v1459_v57, 1 }
 0x18f   :  { %v1461_v11 = vmax.f32 %v1459_v57, %v1460_v45 }
 0x191   :  { %1463 = vst.msk [vmem:[#allocation2] sm:$0x1] %vm1462_vm12, %v1461_v11 }
 0x192   :  { %1491 = dma.vmem_to_hbm [thread:$0]  %s1487_s23, 16, %s1489_s26, [#allocation3]  }
 0x193   :  { %1615 = dma.done.wait [#allocation3], 16  }
 0x194   :  { %1616 = vsyncadd [#allocation3], 4294967280 }
 0x195   :  { %1500 = vsyncpa [#allocation3], 1 }

</bundles_post_ra>
